<compile_context>
chip_gen: v6e
topology: v6e:2x2x1
jax: 0.10.0
libtpu: 0.0.40
codegen_flags: <defaults>
</compile_context>

<pallas_src>
import math

import jax
import jax.numpy as jnp
import numpy as np
from jax import lax
from jax.experimental import pallas as pl
from jax.experimental.pallas import tpu as pltpu


def _round_up(x, m):
    return ((x + m - 1) // m) * m


def _pick_time_tile(lp, max_tile):
    """Largest multiple of 128 that divides lp and is <= max_tile."""
    m = lp // 128
    best = 1
    for g in range(1, m + 1):
        if m % g == 0 and 128 * g <= max_tile:
            best = g
    return 128 * best


def _vmem_capacity_bytes():
    try:
        return int(pltpu.get_tpu_info().vmem_capacity_bytes)
    except Exception:
        return 128 * 1024 * 1024


def init_params(key, embed_dim, ndim=2):
    """Deterministic re-implementation of MultiHeadEMA.reset_parameters (unidirectional)."""
    kd, ka, kb, kg, ko = jax.random.split(key, 5)
    delta = 0.2 * jax.random.normal(kd, (embed_dim, ndim, 1), jnp.float32)
    alpha = 0.2 * jax.random.normal(ka, (embed_dim, ndim, 1), jnp.float32)
    val = jnp.ones((ndim, 1), jnp.float32)
    if ndim > 1:
        val = val.at[1::2].set(-1.0)
    beta = 0.02 * jax.random.normal(kb, (embed_dim, ndim, 1), jnp.float32) + val
    gamma = jax.random.normal(kg, (embed_dim, ndim), jnp.float32)
    omega = jax.random.normal(ko, (embed_dim,), jnp.float32)
    return dict(delta=delta, alpha=alpha, beta=beta, gamma=gamma, omega=omega)


def multi_head_ema_forward(x_tbd, params, ndim=2, *, mxu_dtype=jnp.bfloat16,
                           channels_per_step=None, max_time_tile=512):
    """x_tbd: (T, B, D) -> (T, B, D), same dtype as the input (matches torch forward)."""
    L, B, D = x_tbd.shape
    scale = math.sqrt(1.0 / ndim)

    # ---- padded geometry ----
    Lp = _round_up(L, 128)                 # lane-dense time axis
    Bp = _round_up(B, 8)                   # full sublanes
    Lt = _pick_time_tile(Lp, max_time_tile)
    nT = Lp // Lt
    LK = Lt + Lp                           # 1-D kernel row, left-padded with Lt zeros

    # ---- 1-D EMA kernel + omega, computed once in XLA (only O(D*ndim*Lp) exps) ----
    p = jax.nn.sigmoid(params["delta"][..., 0])                    # (D, N)
    a = jax.nn.sigmoid(params["alpha"][..., 0])                    # (D, N)
    q = 1.0 - p * a                                                # in (0, 1)
    c = p * params["beta"][..., 0] * params["gamma"] * scale       # (D, N)
    lpos = jnp.arange(Lp, dtype=jnp.float32)
    k_1d = jnp.einsum("dn,dnl->dl", c,
                      jnp.exp(lpos[None, None, :] * jnp.log(q)[:, :, None]))  # (D, Lp)

    # ---- adaptive channel chunking (>= ~256 KiB of x per grid step, >= 2 chunks) ----
    mxu_bytes = jnp.dtype(mxu_dtype).itemsize
    out_dtype = mxu_dtype                  # bf16 output on the fast path
    bytes_per_chan = Bp * Lp * mxu_bytes
    if channels_per_step is None:
        dc = _round_up(max(1, (256 * 1024 + bytes_per_chan - 1) // bytes_per_chan), 8)
        dc = min(dc, 64)
    else:
        dc = _round_up(channels_per_step, 8)
    dc = min(dc, _round_up(D, 8))
    Dp = _round_up(D, dc)
    if Dp // dc < 2:                       # >= 2 grid steps so both v7x TCs get work
        Dp = 2 * dc
    num_chunks = Dp // dc

    # ---- padded operands (cast to MXU dtype *before* pad/transpose) ----
    k_ext = jnp.zeros((Dp, LK), jnp.float32).at[:D, Lt:].set(k_1d)
    omega = jnp.zeros((Dp,), jnp.float32).at[:D].set(params["omega"])
    x_pad = jnp.zeros((Lp, Bp, Dp), mxu_dtype).at[:L, :B, :D].set(x_tbd.astype(mxu_dtype))
    # TODO(synk): keep activations channel-major between layers to delete this
    # transpose (and the inverse below) -- the only full-tensor HBM round trips left.
    x_dbl = jnp.transpose(x_pad, (2, 1, 0))                        # (Dp, Bp, Lp)

    unroll = (dc * (nT * (nT + 1) // 2)) <= 64   # unroll channel loop only when small

    def kernel(omega_ref, k_ref, x_ref, out_ref, acc_ref):
        # Hoisted once per grid step: causal (upper-triangular incl. diagonal) selector.
        tri = (lax.broadcasted_iota(jnp.int32, (Lt, Lt), 1) >=
               lax.broadcasted_iota(jnp.int32, (Lt, Lt), 0))
        chunk = pl.program_id(0)

        def chan_body(cloc, carry):
            ch = chunk * dc + cloc                                 # global channel id
            acc_ref[...] = jnp.zeros_like(acc_ref)
            # Block-Toeplitz causal conv: build each (Lt, Lt) Toeplitz block once per
            # block-diagonal offset d and reuse it for all (src=j, dst=j+d) pairs.
            for d in range(nT):
                off = d * Lt
                # k_ext row: [0]*Lt ++ k[0:Lp];  hi[t']=k[d*Lt+t'], lo[t']=k[(d-1)*Lt+t']
                hi = k_ref[pl.ds(cloc, 1), Lt + off:2 * Lt + off]  # (1, Lt)
                lo = k_ref[pl.ds(cloc, 1), off:Lt + off]           # (1, Lt)
                hi = jnp.broadcast_to(hi, (Lt, Lt))
                lo = jnp.broadcast_to(lo, (Lt, Lt))
                # row s' rolled right by s': column t' holds window[(t'-s') mod Lt]  (XLU)
                hi = pltpu.roll(hi, 0, 1, stride=1, stride_axis=0)
                lo = pltpu.roll(lo, 0, 1, stride=1, stride_axis=0)
                # t'>=s' -> k[d*Lt + t'-s'] ; t'<s' -> k[(d-1)*Lt + t'-s'+Lt] = same value
                toep = jnp.where(tri, hi, lo).astype(mxu_dtype)    # (Lt, Lt)
                for j in range(nT - d):
                    src = slice(j * Lt, (j + 1) * Lt)
                    dst = slice((j + d) * Lt, (j + d + 1) * Lt)
                    acc_ref[:, dst] += jnp.dot(x_ref[cloc, :, src], toep,
                                               preferred_element_type=jnp.float32)
            # Epilogue per time tile: residual + SiLU in f32, store in out dtype.
            # TODO(synk): the residual uses the mxu_dtype copy of x; pass mxu_dtype=f32
            # (or a separate f32 residual input) when exact f32 residual is required.
            om = omega_ref[ch]
            for t in range(nT):
                sl = slice(t * Lt, (t + 1) * Lt)
                y = acc_ref[:, sl] + x_ref[cloc, :, sl].astype(jnp.float32) * om
                out_ref[cloc, :, sl] = (y * jax.nn.sigmoid(y)).astype(out_ref.dtype)
            return carry

        lax.fori_loop(0, dc, chan_body, 0, unroll=unroll)

    # ---- VMEM budget from the actual footprint ----
    need = (2 * dc * Bp * Lp * mxu_bytes                           # x blocks (dbl-buf)
            + 2 * dc * LK * 4                                      # k blocks
            + 2 * dc * Bp * Lp * jnp.dtype(out_dtype).itemsize     # out blocks
            + Bp * Lp * 4                                          # accumulator scratch
            + 8 * Lt * Lt * 4)                                     # Toeplitz temporaries
    cap = min(int(0.75 * _vmem_capacity_bytes()), 112 * 1024 * 1024)
    vmem_limit = int(min(cap, max(int(1.5 * need), 32 * 1024 * 1024)))

    out_dbl = pl.pallas_call(
        kernel,
        out_shape=jax.ShapeDtypeStruct((Dp, Bp, Lp), out_dtype),
        grid=(num_chunks,),
        in_specs=[
            pl.BlockSpec(memory_space=pltpu.MemorySpace.SMEM),     # omega (whole, tiny)
            pl.BlockSpec((dc, LK), lambda i: (i, 0)),              # 1-D kernel chunk
            pl.BlockSpec((dc, Bp, Lp), lambda i: (i, 0, 0)),       # x channel-chunk
        ],
        out_specs=pl.BlockSpec((dc, Bp, Lp), lambda i: (i, 0, 0)),
        scratch_shapes=[pltpu.VMEM((Bp, Lp), jnp.float32)],
        compiler_params=pltpu.CompilerParams(
            dimension_semantics=("parallel",),
            vmem_limit_bytes=vmem_limit,
        ),
    )(omega, k_ext, x_dbl)

    # TODO(synk): the MXU is still M-starved (Bp=8 LHS rows per 128/256-wide weight
    # tile); a chunked-recurrence / block-scan formulation (or folding more batch into
    # M) would lift MXU utilization further for very long sequences.
    out = jnp.transpose(out_dbl[:D, :B, :L], (2, 1, 0))            # (T, B, D)
    return out.astype(x_tbd.dtype)


def reference_forward(x_tbd, params, ndim=2):
    """Pure-JAX mirror of the torch forward (FFT conv) for verification."""
    L, B, D = x_tbd.shape
    scale = math.sqrt(1.0 / ndim)
    residual = x_tbd * params["omega"]
    xp = jnp.transpose(x_tbd, (1, 2, 0))                           # (B, D, L)
    p = jax.nn.sigmoid(params["delta"])
    a = jax.nn.sigmoid(params["alpha"])
    q = 1.0 - p * a
    vander = jnp.arange(L, dtype=jnp.float32).reshape(1, 1, L) * jnp.log(q)
    kern = p * params["beta"] * jnp.exp(vander)
    k = jnp.einsum("dnl,dn->dl", kern, params["gamma"] * scale)
    k_f = jnp.fft.rfft(k.astype(jnp.float32), n=2 * L)
    x_f = jnp.fft.rfft(xp.astype(jnp.float32), n=2 * L)
    out = jnp.fft.irfft(x_f * k_f, n=2 * L)[..., :L]
    out = jnp.transpose(out, (2, 0, 1)) + residual
    return jax.nn.silu(out)


if __name__ == "__main__":
    ndim = 2
    key = jax.random.PRNGKey(0)
    k_params, k_x, k_params2, k_x2 = jax.random.split(key, 4)

    # Case 1: small shapes, single time tile, 2 channel chunks (one is padding).
    seq_len, bsz, embed_dim = 16, 4, 8
    params = init_params(k_params, embed_dim, ndim)
    x = jax.random.normal(k_x, (seq_len, bsz, embed_dim), jnp.float32)   # (T, B, D)
    ref = jax.block_until_ready(reference_forward(x, params, ndim))

    out_f32 = jax.block_until_ready(
        multi_head_ema_forward(x, params, ndim, mxu_dtype=jnp.float32))
    np.testing.assert_allclose(np.asarray(out_f32), np.asarray(ref), atol=1e-3, rtol=1e-3)

    out_bf16 = jax.block_until_ready(multi_head_ema_forward(x, params, ndim))
    np.testing.assert_allclose(np.asarray(out_bf16), np.asarray(ref), atol=1e-1, rtol=1e-1)

    # Case 2: non-multiple T/B/D, multiple channel chunks and multiple time tiles
    # (exercises padding paths and the off-diagonal Toeplitz blocks).
    seq_len2, bsz2, embed_dim2 = 300, 3, 20
    params2 = init_params(k_params2, embed_dim2, ndim)
    x2 = jax.random.normal(k_x2, (seq_len2, bsz2, embed_dim2), jnp.float32)
    ref2 = jax.block_until_ready(reference_forward(x2, params2, ndim))

    out2 = jax.block_until_ready(
        multi_head_ema_forward(x2, params2, ndim, mxu_dtype=jnp.float32,
                               channels_per_step=8, max_time_tile=128))
    np.testing.assert_allclose(np.asarray(out2), np.asarray(ref2), atol=1e-3, rtol=1e-3)

    print("KERNEL_OK")
</pallas_src>

<mosaic_0001>
module attributes {stable_mosaic.version = 11 : i64} {
  func.func @kernel(%arg0: i32, %arg1: memref<16xf32, #tpu.memory_space<smem>>, %arg2: memref<8x256xf32, #tpu.memory_space<vmem>>, %arg3: memref<8x8x128xf32, #tpu.memory_space<vmem>>, %arg4: memref<8x8x128xf32, #tpu.memory_space<vmem>>, %arg5: memref<8x128xf32, #tpu.memory_space<vmem>>) attributes {dimension_semantics = [#tpu.dimension_semantics<parallel>], iteration_bounds = array<i64: 2>, scalar_prefetch = 0 : i64, scratch_operands = 1 : i64, tpu.core_type = #tpu.core_type<tc>, window_params = [{transform_indices = @transform_0, window_bounds = array<i64: 16>}, {transform_indices = @transform_1, window_bounds = array<i64: 8, 256>}, {transform_indices = @transform_2, window_bounds = array<i64: 8, 8, 128>}, {transform_indices = @transform_3, window_bounds = array<i64: 8, 8, 128>}]} {
    %0 = tpu.iota {dimensions = array<i32: 1>} : vector<128x128xi32>
    %1 = tpu.iota {dimensions = array<i32: 0>} : vector<128x128xi32>
    %2 = arith.cmpi sge, %0, %1 : vector<128x128xi32>
    %c0_i32 = arith.constant 0 : i32
    %c8_i32 = arith.constant 8 : i32
    %3 = arith.muli %arg0, %c8_i32 : i32
    %4 = arith.addi %3, %c0_i32 : i32
    %cst = arith.constant 0.000000e+00 : f32
    %5 = vector.broadcast %cst : f32 to vector<8x128xf32>
    %c0 = arith.constant 0 : index
    %c0_0 = arith.constant 0 : index
    %6 = vector.load %arg5[%c0, %c0_0] : memref<8x128xf32, #tpu.memory_space<vmem>>, vector<8x128xf32>
    tpu.vector_store %arg5[%c0, %c0_0], %5 {strides = array<i32>} : memref<8x128xf32, #tpu.memory_space<vmem>>, vector<8x128xf32>,
    %7 = arith.index_cast %c0_i32 : i32 to index
    %c128 = arith.constant 128 : index
    %8 = vector.load %arg2[%7, %c128] : memref<8x256xf32, #tpu.memory_space<vmem>>, vector<1x128xf32>
    %9 = arith.index_cast %c0_i32 : i32 to index
    %c0_1 = arith.constant 0 : index
    %10 = vector.load %arg2[%9, %c0_1] : memref<8x256xf32, #tpu.memory_space<vmem>>, vector<1x128xf32>
    %11 = vector.shape_cast %8 : vector<1x128xf32> to vector<1x128xf32>
    %12 = vector.broadcast %11 : vector<1x128xf32> to vector<128x128xf32>
    %13 = vector.shape_cast %10 : vector<1x128xf32> to vector<1x128xf32>
    %14 = vector.broadcast %13 : vector<1x128xf32> to vector<128x128xf32>
    %c0_i32_2 = arith.constant 0 : i32
    %15 = tpu.dynamic_rotate %12 by %c0_i32_2 dim 1 {stride = 1 : si32, stride_dimension = 0 : si32} : vector<128x128xf32>, i32 -> vector<128x128xf32>
    %c0_i32_3 = arith.constant 0 : i32
    %16 = tpu.dynamic_rotate %14 by %c0_i32_3 dim 1 {stride = 1 : si32, stride_dimension = 0 : si32} : vector<128x128xf32>, i32 -> vector<128x128xf32>
    %17 = arith.select %2, %15, %16 : vector<128x128xi1>, vector<128x128xf32>
    %c0_4 = arith.constant 0 : index
    %c0_5 = arith.constant 0 : index
    %18 = vector.load %arg5[%c0_4, %c0_5] : memref<8x128xf32, #tpu.memory_space<vmem>>, vector<8x128xf32>
    %19 = arith.index_cast %c0_i32 : i32 to index
    %c0_6 = arith.constant 0 : index
    %c0_7 = arith.constant 0 : index
    %20 = vector.load %arg3[%19, %c0_6, %c0_7] : memref<8x8x128xf32, #tpu.memory_space<vmem>>, vector<1x8x128xf32>
    %21 = vector.shape_cast %20 : vector<1x8x128xf32> to vector<8x128xf32>
    %cst_8 = arith.constant dense<0.000000e+00> : vector<8x128xf32>
    %22 = tpu.matmul %21, %17, %cst_8 {dimension_numbers = #tpu.dot_dimension_numbers<[1], [0], [0], [1], [0, 0, 1, 1], [], []>} : vector<8x128xf32>, vector<128x128xf32>, vector<8x128xf32> -> vector<8x128xf32>
    %23 = arith.addf %18, %22 : vector<8x128xf32>
    %c0_9 = arith.constant 0 : index
    %c0_10 = arith.constant 0 : index
    %24 = vector.load %arg5[%c0_9, %c0_10] : memref<8x128xf32, #tpu.memory_space<vmem>>, vector<8x128xf32>
    tpu.vector_store %arg5[%c0_9, %c0_10], %23 {strides = array<i32>} : memref<8x128xf32, #tpu.memory_space<vmem>>, vector<8x128xf32>,
    %25 = arith.index_cast %4 : i32 to index
    %26 = memref.load %arg1[%25] : memref<16xf32, #tpu.memory_space<smem>>
    %c0_11 = arith.constant 0 : index
    %c0_12 = arith.constant 0 : index
    %27 = vector.load %arg5[%c0_11, %c0_12] : memref<8x128xf32, #tpu.memory_space<vmem>>, vector<8x128xf32>
    %28 = arith.index_cast %c0_i32 : i32 to index
    %c0_13 = arith.constant 0 : index
    %c0_14 = arith.constant 0 : index
    %29 = vector.load %arg3[%28, %c0_13, %c0_14] : memref<8x8x128xf32, #tpu.memory_space<vmem>>, vector<1x8x128xf32>
    %30 = vector.shape_cast %29 : vector<1x8x128xf32> to vector<8x128xf32>
    %31 = vector.broadcast %26 : f32 to vector<8x128xf32>
    %32 = arith.mulf %30, %31 : vector<8x128xf32>
    %33 = arith.addf %27, %32 : vector<8x128xf32>
    %34 = arith.negf %33 : vector<8x128xf32>
    %35 = math.exp %34 : vector<8x128xf32>
    %cst_15 = arith.constant 1.000000e+00 : f32
    %36 = vector.broadcast %cst_15 : f32 to vector<8x128xf32>
    %37 = arith.addf %36, %35 : vector<8x128xf32>
    %38 = arith.divf %36, %37 : vector<8x128xf32>
    %39 = arith.mulf %33, %38 : vector<8x128xf32>
    %40 = arith.index_cast %c0_i32 : i32 to index
    %c0_16 = arith.constant 0 : index
    %c0_17 = arith.constant 0 : index
    %41 = vector.load %arg4[%40, %c0_16, %c0_17] : memref<8x8x128xf32, #tpu.memory_space<vmem>>, vector<1x8x128xf32>
    %42 = vector.shape_cast %41 : vector<1x8x128xf32> to vector<8x128xf32>
    %43 = vector.shape_cast %39 : vector<8x128xf32> to vector<1x8x128xf32>
    tpu.vector_store %arg4[%40, %c0_16, %c0_17], %43 {strides = array<i32>} : memref<8x8x128xf32, #tpu.memory_space<vmem>>, vector<1x8x128xf32>,
    %c1_i32 = arith.constant 1 : i32
    %c8_i32_18 = arith.constant 8 : i32
    %44 = arith.muli %arg0, %c8_i32_18 : i32
    %45 = arith.addi %44, %c1_i32 : i32
    %cst_19 = arith.constant 0.000000e+00 : f32
    %46 = vector.broadcast %cst_19 : f32 to vector<8x128xf32>
    %c0_20 = arith.constant 0 : index
    %c0_21 = arith.constant 0 : index
    %47 = vector.load %arg5[%c0_20, %c0_21] : memref<8x128xf32, #tpu.memory_space<vmem>>, vector<8x128xf32>
    tpu.vector_store %arg5[%c0_20, %c0_21], %46 {strides = array<i32>} : memref<8x128xf32, #tpu.memory_space<vmem>>, vector<8x128xf32>,
    %48 = arith.index_cast %c1_i32 : i32 to index
    %c128_22 = arith.constant 128 : index
    %49 = vector.load %arg2[%48, %c128_22] : memref<8x256xf32, #tpu.memory_space<vmem>>, vector<1x128xf32>
    %50 = arith.index_cast %c1_i32 : i32 to index
    %c0_23 = arith.constant 0 : index
    %51 = vector.load %arg2[%50, %c0_23] : memref<8x256xf32, #tpu.memory_space<vmem>>, vector<1x128xf32>
    %52 = vector.shape_cast %49 : vector<1x128xf32> to vector<1x128xf32>
    %53 = vector.broadcast %52 : vector<1x128xf32> to vector<128x128xf32>
    %54 = vector.shape_cast %51 : vector<1x128xf32> to vector<1x128xf32>
    %55 = vector.broadcast %54 : vector<1x128xf32> to vector<128x128xf32>
    %c0_i32_24 = arith.constant 0 : i32
    %56 = tpu.dynamic_rotate %53 by %c0_i32_24 dim 1 {stride = 1 : si32, stride_dimension = 0 : si32} : vector<128x128xf32>, i32 -> vector<128x128xf32>
    %c0_i32_25 = arith.constant 0 : i32
    %57 = tpu.dynamic_rotate %55 by %c0_i32_25 dim 1 {stride = 1 : si32, stride_dimension = 0 : si32} : vector<128x128xf32>, i32 -> vector<128x128xf32>
    %58 = arith.select %2, %56, %57 : vector<128x128xi1>, vector<128x128xf32>
    %c0_26 = arith.constant 0 : index
    %c0_27 = arith.constant 0 : index
    %59 = vector.load %arg5[%c0_26, %c0_27] : memref<8x128xf32, #tpu.memory_space<vmem>>, vector<8x128xf32>
    %60 = arith.index_cast %c1_i32 : i32 to index
    %c0_28 = arith.constant 0 : index
    %c0_29 = arith.constant 0 : index
    %61 = vector.load %arg3[%60, %c0_28, %c0_29] : memref<8x8x128xf32, #tpu.memory_space<vmem>>, vector<1x8x128xf32>
    %62 = vector.shape_cast %61 : vector<1x8x128xf32> to vector<8x128xf32>
    %cst_30 = arith.constant dense<0.000000e+00> : vector<8x128xf32>
    %63 = tpu.matmul %62, %58, %cst_30 {dimension_numbers = #tpu.dot_dimension_numbers<[1], [0], [0], [1], [0, 0, 1, 1], [], []>} : vector<8x128xf32>, vector<128x128xf32>, vector<8x128xf32> -> vector<8x128xf32>
    %64 = arith.addf %59, %63 : vector<8x128xf32>
    %c0_31 = arith.constant 0 : index
    %c0_32 = arith.constant 0 : index
    %65 = vector.load %arg5[%c0_31, %c0_32] : memref<8x128xf32, #tpu.memory_space<vmem>>, vector<8x128xf32>
    tpu.vector_store %arg5[%c0_31, %c0_32], %64 {strides = array<i32>} : memref<8x128xf32, #tpu.memory_space<vmem>>, vector<8x128xf32>,
    %66 = arith.index_cast %45 : i32 to index
    %67 = memref.load %arg1[%66] : memref<16xf32, #tpu.memory_space<smem>>
    %c0_33 = arith.constant 0 : index
    %c0_34 = arith.constant 0 : index
    %68 = vector.load %arg5[%c0_33, %c0_34] : memref<8x128xf32, #tpu.memory_space<vmem>>, vector<8x128xf32>
    %69 = arith.index_cast %c1_i32 : i32 to index
    %c0_35 = arith.constant 0 : index
    %c0_36 = arith.constant 0 : index
    %70 = vector.load %arg3[%69, %c0_35, %c0_36] : memref<8x8x128xf32, #tpu.memory_space<vmem>>, vector<1x8x128xf32>
    %71 = vector.shape_cast %70 : vector<1x8x128xf32> to vector<8x128xf32>
    %72 = vector.broadcast %67 : f32 to vector<8x128xf32>
    %73 = arith.mulf %71, %72 : vector<8x128xf32>
    %74 = arith.addf %68, %73 : vector<8x128xf32>
    %75 = arith.negf %74 : vector<8x128xf32>
    %76 = math.exp %75 : vector<8x128xf32>
    %cst_37 = arith.constant 1.000000e+00 : f32
    %77 = vector.broadcast %cst_37 : f32 to vector<8x128xf32>
    %78 = arith.addf %77, %76 : vector<8x128xf32>
    %79 = arith.divf %77, %78 : vector<8x128xf32>
    %80 = arith.mulf %74, %79 : vector<8x128xf32>
    %81 = arith.index_cast %c1_i32 : i32 to index
    %c0_38 = arith.constant 0 : index
    %c0_39 = arith.constant 0 : index
    %82 = vector.load %arg4[%81, %c0_38, %c0_39] : memref<8x8x128xf32, #tpu.memory_space<vmem>>, vector<1x8x128xf32>
    %83 = vector.shape_cast %82 : vector<1x8x128xf32> to vector<8x128xf32>
    %84 = vector.shape_cast %80 : vector<8x128xf32> to vector<1x8x128xf32>
    tpu.vector_store %arg4[%81, %c0_38, %c0_39], %84 {strides = array<i32>} : memref<8x8x128xf32, #tpu.memory_space<vmem>>, vector<1x8x128xf32>,
    %c2_i32 = arith.constant 2 : i32
    %c8_i32_40 = arith.constant 8 : i32
    %85 = arith.muli %arg0, %c8_i32_40 : i32
    %86 = arith.addi %85, %c2_i32 : i32
    %cst_41 = arith.constant 0.000000e+00 : f32
    %87 = vector.broadcast %cst_41 : f32 to vector<8x128xf32>
    %c0_42 = arith.constant 0 : index
    %c0_43 = arith.constant 0 : index
    %88 = vector.load %arg5[%c0_42, %c0_43] : memref<8x128xf32, #tpu.memory_space<vmem>>, vector<8x128xf32>
    tpu.vector_store %arg5[%c0_42, %c0_43], %87 {strides = array<i32>} : memref<8x128xf32, #tpu.memory_space<vmem>>, vector<8x128xf32>,
    %89 = arith.index_cast %c2_i32 : i32 to index
    %c128_44 = arith.constant 128 : index
    %90 = vector.load %arg2[%89, %c128_44] : memref<8x256xf32, #tpu.memory_space<vmem>>, vector<1x128xf32>
    %91 = arith.index_cast %c2_i32 : i32 to index
    %c0_45 = arith.constant 0 : index
    %92 = vector.load %arg2[%91, %c0_45] : memref<8x256xf32, #tpu.memory_space<vmem>>, vector<1x128xf32>
    %93 = vector.shape_cast %90 : vector<1x128xf32> to vector<1x128xf32>
    %94 = vector.broadcast %93 : vector<1x128xf32> to vector<128x128xf32>
    %95 = vector.shape_cast %92 : vector<1x128xf32> to vector<1x128xf32>
    %96 = vector.broadcast %95 : vector<1x128xf32> to vector<128x128xf32>
    %c0_i32_46 = arith.constant 0 : i32
    %97 = tpu.dynamic_rotate %94 by %c0_i32_46 dim 1 {stride = 1 : si32, stride_dimension = 0 : si32} : vector<128x128xf32>, i32 -> vector<128x128xf32>
    %c0_i32_47 = arith.constant 0 : i32
    %98 = tpu.dynamic_rotate %96 by %c0_i32_47 dim 1 {stride = 1 : si32, stride_dimension = 0 : si32} : vector<128x128xf32>, i32 -> vector<128x128xf32>
    %99 = arith.select %2, %97, %98 : vector<128x128xi1>, vector<128x128xf32>
    %c0_48 = arith.constant 0 : index
    %c0_49 = arith.constant 0 : index
    %100 = vector.load %arg5[%c0_48, %c0_49] : memref<8x128xf32, #tpu.memory_space<vmem>>, vector<8x128xf32>
    %101 = arith.index_cast %c2_i32 : i32 to index
    %c0_50 = arith.constant 0 : index
    %c0_51 = arith.constant 0 : index
    %102 = vector.load %arg3[%101, %c0_50, %c0_51] : memref<8x8x128xf32, #tpu.memory_space<vmem>>, vector<1x8x128xf32>
    %103 = vector.shape_cast %102 : vector<1x8x128xf32> to vector<8x128xf32>
    %cst_52 = arith.constant dense<0.000000e+00> : vector<8x128xf32>
    %104 = tpu.matmul %103, %99, %cst_52 {dimension_numbers = #tpu.dot_dimension_numbers<[1], [0], [0], [1], [0, 0, 1, 1], [], []>} : vector<8x128xf32>, vector<128x128xf32>, vector<8x128xf32> -> vector<8x128xf32>
    %105 = arith.addf %100, %104 : vector<8x128xf32>
    %c0_53 = arith.constant 0 : index
    %c0_54 = arith.constant 0 : index
    %106 = vector.load %arg5[%c0_53, %c0_54] : memref<8x128xf32, #tpu.memory_space<vmem>>, vector<8x128xf32>
    tpu.vector_store %arg5[%c0_53, %c0_54], %105 {strides = array<i32>} : memref<8x128xf32, #tpu.memory_space<vmem>>, vector<8x128xf32>,
    %107 = arith.index_cast %86 : i32 to index
    %108 = memref.load %arg1[%107] : memref<16xf32, #tpu.memory_space<smem>>
    %c0_55 = arith.constant 0 : index
    %c0_56 = arith.constant 0 : index
    %109 = vector.load %arg5[%c0_55, %c0_56] : memref<8x128xf32, #tpu.memory_space<vmem>>, vector<8x128xf32>
    %110 = arith.index_cast %c2_i32 : i32 to index
    %c0_57 = arith.constant 0 : index
    %c0_58 = arith.constant 0 : index
    %111 = vector.load %arg3[%110, %c0_57, %c0_58] : memref<8x8x128xf32, #tpu.memory_space<vmem>>, vector<1x8x128xf32>
    %112 = vector.shape_cast %111 : vector<1x8x128xf32> to vector<8x128xf32>
    %113 = vector.broadcast %108 : f32 to vector<8x128xf32>
    %114 = arith.mulf %112, %113 : vector<8x128xf32>
    %115 = arith.addf %109, %114 : vector<8x128xf32>
    %116 = arith.negf %115 : vector<8x128xf32>
    %117 = math.exp %116 : vector<8x128xf32>
    %cst_59 = arith.constant 1.000000e+00 : f32
    %118 = vector.broadcast %cst_59 : f32 to vector<8x128xf32>
    %119 = arith.addf %118, %117 : vector<8x128xf32>
    %120 = arith.divf %118, %119 : vector<8x128xf32>
    %121 = arith.mulf %115, %120 : vector<8x128xf32>
    %122 = arith.index_cast %c2_i32 : i32 to index
    %c0_60 = arith.constant 0 : index
    %c0_61 = arith.constant 0 : index
    %123 = vector.load %arg4[%122, %c0_60, %c0_61] : memref<8x8x128xf32, #tpu.memory_space<vmem>>, vector<1x8x128xf32>
    %124 = vector.shape_cast %123 : vector<1x8x128xf32> to vector<8x128xf32>
    %125 = vector.shape_cast %121 : vector<8x128xf32> to vector<1x8x128xf32>
    tpu.vector_store %arg4[%122, %c0_60, %c0_61], %125 {strides = array<i32>} : memref<8x8x128xf32, #tpu.memory_space<vmem>>, vector<1x8x128xf32>,
    %c3_i32 = arith.constant 3 : i32
    %c8_i32_62 = arith.constant 8 : i32
    %126 = arith.muli %arg0, %c8_i32_62 : i32
    %127 = arith.addi %126, %c3_i32 : i32
    %cst_63 = arith.constant 0.000000e+00 : f32
    %128 = vector.broadcast %cst_63 : f32 to vector<8x128xf32>
    %c0_64 = arith.constant 0 : index
    %c0_65 = arith.constant 0 : index
    %129 = vector.load %arg5[%c0_64, %c0_65] : memref<8x128xf32, #tpu.memory_space<vmem>>, vector<8x128xf32>
    tpu.vector_store %arg5[%c0_64, %c0_65], %128 {strides = array<i32>} : memref<8x128xf32, #tpu.memory_space<vmem>>, vector<8x128xf32>,
    %130 = arith.index_cast %c3_i32 : i32 to index
    %c128_66 = arith.constant 128 : index
    %131 = vector.load %arg2[%130, %c128_66] : memref<8x256xf32, #tpu.memory_space<vmem>>, vector<1x128xf32>
    %132 = arith.index_cast %c3_i32 : i32 to index
    %c0_67 = arith.constant 0 : index
    %133 = vector.load %arg2[%132, %c0_67] : memref<8x256xf32, #tpu.memory_space<vmem>>, vector<1x128xf32>
    %134 = vector.shape_cast %131 : vector<1x128xf32> to vector<1x128xf32>
    %135 = vector.broadcast %134 : vector<1x128xf32> to vector<128x128xf32>
    %136 = vector.shape_cast %133 : vector<1x128xf32> to vector<1x128xf32>
    %137 = vector.broadcast %136 : vector<1x128xf32> to vector<128x128xf32>
    %c0_i32_68 = arith.constant 0 : i32
    %138 = tpu.dynamic_rotate %135 by %c0_i32_68 dim 1 {stride = 1 : si32, stride_dimension = 0 : si32} : vector<128x128xf32>, i32 -> vector<128x128xf32>
    %c0_i32_69 = arith.constant 0 : i32
    %139 = tpu.dynamic_rotate %137 by %c0_i32_69 dim 1 {stride = 1 : si32, stride_dimension = 0 : si32} : vector<128x128xf32>, i32 -> vector<128x128xf32>
    %140 = arith.select %2, %138, %139 : vector<128x128xi1>, vector<128x128xf32>
    %c0_70 = arith.constant 0 : index
    %c0_71 = arith.constant 0 : index
    %141 = vector.load %arg5[%c0_70, %c0_71] : memref<8x128xf32, #tpu.memory_space<vmem>>, vector<8x128xf32>
    %142 = arith.index_cast %c3_i32 : i32 to index
    %c0_72 = arith.constant 0 : index
    %c0_73 = arith.constant 0 : index
    %143 = vector.load %arg3[%142, %c0_72, %c0_73] : memref<8x8x128xf32, #tpu.memory_space<vmem>>, vector<1x8x128xf32>
    %144 = vector.shape_cast %143 : vector<1x8x128xf32> to vector<8x128xf32>
    %cst_74 = arith.constant dense<0.000000e+00> : vector<8x128xf32>
    %145 = tpu.matmul %144, %140, %cst_74 {dimension_numbers = #tpu.dot_dimension_numbers<[1], [0], [0], [1], [0, 0, 1, 1], [], []>} : vector<8x128xf32>, vector<128x128xf32>, vector<8x128xf32> -> vector<8x128xf32>
    %146 = arith.addf %141, %145 : vector<8x128xf32>
    %c0_75 = arith.constant 0 : index
    %c0_76 = arith.constant 0 : index
    %147 = vector.load %arg5[%c0_75, %c0_76] : memref<8x128xf32, #tpu.memory_space<vmem>>, vector<8x128xf32>
    tpu.vector_store %arg5[%c0_75, %c0_76], %146 {strides = array<i32>} : memref<8x128xf32, #tpu.memory_space<vmem>>, vector<8x128xf32>,
    %148 = arith.index_cast %127 : i32 to index
    %149 = memref.load %arg1[%148] : memref<16xf32, #tpu.memory_space<smem>>
    %c0_77 = arith.constant 0 : index
    %c0_78 = arith.constant 0 : index
    %150 = vector.load %arg5[%c0_77, %c0_78] : memref<8x128xf32, #tpu.memory_space<vmem>>, vector<8x128xf32>
    %151 = arith.index_cast %c3_i32 : i32 to index
    %c0_79 = arith.constant 0 : index
    %c0_80 = arith.constant 0 : index
    %152 = vector.load %arg3[%151, %c0_79, %c0_80] : memref<8x8x128xf32, #tpu.memory_space<vmem>>, vector<1x8x128xf32>
    %153 = vector.shape_cast %152 : vector<1x8x128xf32> to vector<8x128xf32>
    %154 = vector.broadcast %149 : f32 to vector<8x128xf32>
    %155 = arith.mulf %153, %154 : vector<8x128xf32>
    %156 = arith.addf %150, %155 : vector<8x128xf32>
    %157 = arith.negf %156 : vector<8x128xf32>
    %158 = math.exp %157 : vector<8x128xf32>
    %cst_81 = arith.constant 1.000000e+00 : f32
    %159 = vector.broadcast %cst_81 : f32 to vector<8x128xf32>
    %160 = arith.addf %159, %158 : vector<8x128xf32>
    %161 = arith.divf %159, %160 : vector<8x128xf32>
    %162 = arith.mulf %156, %161 : vector<8x128xf32>
    %163 = arith.index_cast %c3_i32 : i32 to index
    %c0_82 = arith.constant 0 : index
    %c0_83 = arith.constant 0 : index
    %164 = vector.load %arg4[%163, %c0_82, %c0_83] : memref<8x8x128xf32, #tpu.memory_space<vmem>>, vector<1x8x128xf32>
    %165 = vector.shape_cast %164 : vector<1x8x128xf32> to vector<8x128xf32>
    %166 = vector.shape_cast %162 : vector<8x128xf32> to vector<1x8x128xf32>
    tpu.vector_store %arg4[%163, %c0_82, %c0_83], %166 {strides = array<i32>} : memref<8x8x128xf32, #tpu.memory_space<vmem>>, vector<1x8x128xf32>,
    %c4_i32 = arith.constant 4 : i32
    %c8_i32_84 = arith.constant 8 : i32
    %167 = arith.muli %arg0, %c8_i32_84 : i32
    %168 = arith.addi %167, %c4_i32 : i32
    %cst_85 = arith.constant 0.000000e+00 : f32
    %169 = vector.broadcast %cst_85 : f32 to vector<8x128xf32>
    %c0_86 = arith.constant 0 : index
    %c0_87 = arith.constant 0 : index
    %170 = vector.load %arg5[%c0_86, %c0_87] : memref<8x128xf32, #tpu.memory_space<vmem>>, vector<8x128xf32>
    tpu.vector_store %arg5[%c0_86, %c0_87], %169 {strides = array<i32>} : memref<8x128xf32, #tpu.memory_space<vmem>>, vector<8x128xf32>,
    %171 = arith.index_cast %c4_i32 : i32 to index
    %c128_88 = arith.constant 128 : index
    %172 = vector.load %arg2[%171, %c128_88] : memref<8x256xf32, #tpu.memory_space<vmem>>, vector<1x128xf32>
    %173 = arith.index_cast %c4_i32 : i32 to index
    %c0_89 = arith.constant 0 : index
    %174 = vector.load %arg2[%173, %c0_89] : memref<8x256xf32, #tpu.memory_space<vmem>>, vector<1x128xf32>
    %175 = vector.shape_cast %172 : vector<1x128xf32> to vector<1x128xf32>
    %176 = vector.broadcast %175 : vector<1x128xf32> to vector<128x128xf32>
    %177 = vector.shape_cast %174 : vector<1x128xf32> to vector<1x128xf32>
    %178 = vector.broadcast %177 : vector<1x128xf32> to vector<128x128xf32>
    %c0_i32_90 = arith.constant 0 : i32
    %179 = tpu.dynamic_rotate %176 by %c0_i32_90 dim 1 {stride = 1 : si32, stride_dimension = 0 : si32} : vector<128x128xf32>, i32 -> vector<128x128xf32>
    %c0_i32_91 = arith.constant 0 : i32
    %180 = tpu.dynamic_rotate %178 by %c0_i32_91 dim 1 {stride = 1 : si32, stride_dimension = 0 : si32} : vector<128x128xf32>, i32 -> vector<128x128xf32>
    %181 = arith.select %2, %179, %180 : vector<128x128xi1>, vector<128x128xf32>
    %c0_92 = arith.constant 0 : index
    %c0_93 = arith.constant 0 : index
    %182 = vector.load %arg5[%c0_92, %c0_93] : memref<8x128xf32, #tpu.memory_space<vmem>>, vector<8x128xf32>
    %183 = arith.index_cast %c4_i32 : i32 to index
    %c0_94 = arith.constant 0 : index
    %c0_95 = arith.constant 0 : index
    %184 = vector.load %arg3[%183, %c0_94, %c0_95] : memref<8x8x128xf32, #tpu.memory_space<vmem>>, vector<1x8x128xf32>
    %185 = vector.shape_cast %184 : vector<1x8x128xf32> to vector<8x128xf32>
    %cst_96 = arith.constant dense<0.000000e+00> : vector<8x128xf32>
    %186 = tpu.matmul %185, %181, %cst_96 {dimension_numbers = #tpu.dot_dimension_numbers<[1], [0], [0], [1], [0, 0, 1, 1], [], []>} : vector<8x128xf32>, vector<128x128xf32>, vector<8x128xf32> -> vector<8x128xf32>
    %187 = arith.addf %182, %186 : vector<8x128xf32>
    %c0_97 = arith.constant 0 : index
    %c0_98 = arith.constant 0 : index
    %188 = vector.load %arg5[%c0_97, %c0_98] : memref<8x128xf32, #tpu.memory_space<vmem>>, vector<8x128xf32>
    tpu.vector_store %arg5[%c0_97, %c0_98], %187 {strides = array<i32>} : memref<8x128xf32, #tpu.memory_space<vmem>>, vector<8x128xf32>,
    %189 = arith.index_cast %168 : i32 to index
    %190 = memref.load %arg1[%189] : memref<16xf32, #tpu.memory_space<smem>>
    %c0_99 = arith.constant 0 : index
    %c0_100 = arith.constant 0 : index
    %191 = vector.load %arg5[%c0_99, %c0_100] : memref<8x128xf32, #tpu.memory_space<vmem>>, vector<8x128xf32>
    %192 = arith.index_cast %c4_i32 : i32 to index
    %c0_101 = arith.constant 0 : index
    %c0_102 = arith.constant 0 : index
    %193 = vector.load %arg3[%192, %c0_101, %c0_102] : memref<8x8x128xf32, #tpu.memory_space<vmem>>, vector<1x8x128xf32>
    %194 = vector.shape_cast %193 : vector<1x8x128xf32> to vector<8x128xf32>
    %195 = vector.broadcast %190 : f32 to vector<8x128xf32>
    %196 = arith.mulf %194, %195 : vector<8x128xf32>
    %197 = arith.addf %191, %196 : vector<8x128xf32>
    %198 = arith.negf %197 : vector<8x128xf32>
    %199 = math.exp %198 : vector<8x128xf32>
    %cst_103 = arith.constant 1.000000e+00 : f32
    %200 = vector.broadcast %cst_103 : f32 to vector<8x128xf32>
    %201 = arith.addf %200, %199 : vector<8x128xf32>
    %202 = arith.divf %200, %201 : vector<8x128xf32>
    %203 = arith.mulf %197, %202 : vector<8x128xf32>
    %204 = arith.index_cast %c4_i32 : i32 to index
    %c0_104 = arith.constant 0 : index
    %c0_105 = arith.constant 0 : index
    %205 = vector.load %arg4[%204, %c0_104, %c0_105] : memref<8x8x128xf32, #tpu.memory_space<vmem>>, vector<1x8x128xf32>
    %206 = vector.shape_cast %205 : vector<1x8x128xf32> to vector<8x128xf32>
    %207 = vector.shape_cast %203 : vector<8x128xf32> to vector<1x8x128xf32>
    tpu.vector_store %arg4[%204, %c0_104, %c0_105], %207 {strides = array<i32>} : memref<8x8x128xf32, #tpu.memory_space<vmem>>, vector<1x8x128xf32>,
    %c5_i32 = arith.constant 5 : i32
    %c8_i32_106 = arith.constant 8 : i32
    %208 = arith.muli %arg0, %c8_i32_106 : i32
    %209 = arith.addi %208, %c5_i32 : i32
    %cst_107 = arith.constant 0.000000e+00 : f32
    %210 = vector.broadcast %cst_107 : f32 to vector<8x128xf32>
    %c0_108 = arith.constant 0 : index
    %c0_109 = arith.constant 0 : index
    %211 = vector.load %arg5[%c0_108, %c0_109] : memref<8x128xf32, #tpu.memory_space<vmem>>, vector<8x128xf32>
    tpu.vector_store %arg5[%c0_108, %c0_109], %210 {strides = array<i32>} : memref<8x128xf32, #tpu.memory_space<vmem>>, vector<8x128xf32>,
    %212 = arith.index_cast %c5_i32 : i32 to index
    %c128_110 = arith.constant 128 : index
    %213 = vector.load %arg2[%212, %c128_110] : memref<8x256xf32, #tpu.memory_space<vmem>>, vector<1x128xf32>
    %214 = arith.index_cast %c5_i32 : i32 to index
    %c0_111 = arith.constant 0 : index
    %215 = vector.load %arg2[%214, %c0_111] : memref<8x256xf32, #tpu.memory_space<vmem>>, vector<1x128xf32>
    %216 = vector.shape_cast %213 : vector<1x128xf32> to vector<1x128xf32>
    %217 = vector.broadcast %216 : vector<1x128xf32> to vector<128x128xf32>
    %218 = vector.shape_cast %215 : vector<1x128xf32> to vector<1x128xf32>
    %219 = vector.broadcast %218 : vector<1x128xf32> to vector<128x128xf32>
    %c0_i32_112 = arith.constant 0 : i32
    %220 = tpu.dynamic_rotate %217 by %c0_i32_112 dim 1 {stride = 1 : si32, stride_dimension = 0 : si32} : vector<128x128xf32>, i32 -> vector<128x128xf32>
    %c0_i32_113 = arith.constant 0 : i32
    %221 = tpu.dynamic_rotate %219 by %c0_i32_113 dim 1 {stride = 1 : si32, stride_dimension = 0 : si32} : vector<128x128xf32>, i32 -> vector<128x128xf32>
    %222 = arith.select %2, %220, %221 : vector<128x128xi1>, vector<128x128xf32>
    %c0_114 = arith.constant 0 : index
    %c0_115 = arith.constant 0 : index
    %223 = vector.load %arg5[%c0_114, %c0_115] : memref<8x128xf32, #tpu.memory_space<vmem>>, vector<8x128xf32>
    %224 = arith.index_cast %c5_i32 : i32 to index
    %c0_116 = arith.constant 0 : index
    %c0_117 = arith.constant 0 : index
    %225 = vector.load %arg3[%224, %c0_116, %c0_117] : memref<8x8x128xf32, #tpu.memory_space<vmem>>, vector<1x8x128xf32>
    %226 = vector.shape_cast %225 : vector<1x8x128xf32> to vector<8x128xf32>
    %cst_118 = arith.constant dense<0.000000e+00> : vector<8x128xf32>
    %227 = tpu.matmul %226, %222, %cst_118 {dimension_numbers = #tpu.dot_dimension_numbers<[1], [0], [0], [1], [0, 0, 1, 1], [], []>} : vector<8x128xf32>, vector<128x128xf32>, vector<8x128xf32> -> vector<8x128xf32>
    %228 = arith.addf %223, %227 : vector<8x128xf32>
    %c0_119 = arith.constant 0 : index
    %c0_120 = arith.constant 0 : index
    %229 = vector.load %arg5[%c0_119, %c0_120] : memref<8x128xf32, #tpu.memory_space<vmem>>, vector<8x128xf32>
    tpu.vector_store %arg5[%c0_119, %c0_120], %228 {strides = array<i32>} : memref<8x128xf32, #tpu.memory_space<vmem>>, vector<8x128xf32>,
    %230 = arith.index_cast %209 : i32 to index
    %231 = memref.load %arg1[%230] : memref<16xf32, #tpu.memory_space<smem>>
    %c0_121 = arith.constant 0 : index
    %c0_122 = arith.constant 0 : index
    %232 = vector.load %arg5[%c0_121, %c0_122] : memref<8x128xf32, #tpu.memory_space<vmem>>, vector<8x128xf32>
    %233 = arith.index_cast %c5_i32 : i32 to index
    %c0_123 = arith.constant 0 : index
    %c0_124 = arith.constant 0 : index
    %234 = vector.load %arg3[%233, %c0_123, %c0_124] : memref<8x8x128xf32, #tpu.memory_space<vmem>>, vector<1x8x128xf32>
    %235 = vector.shape_cast %234 : vector<1x8x128xf32> to vector<8x128xf32>
    %236 = vector.broadcast %231 : f32 to vector<8x128xf32>
    %237 = arith.mulf %235, %236 : vector<8x128xf32>
    %238 = arith.addf %232, %237 : vector<8x128xf32>
    %239 = arith.negf %238 : vector<8x128xf32>
    %240 = math.exp %239 : vector<8x128xf32>
    %cst_125 = arith.constant 1.000000e+00 : f32
    %241 = vector.broadcast %cst_125 : f32 to vector<8x128xf32>
    %242 = arith.addf %241, %240 : vector<8x128xf32>
    %243 = arith.divf %241, %242 : vector<8x128xf32>
    %244 = arith.mulf %238, %243 : vector<8x128xf32>
    %245 = arith.index_cast %c5_i32 : i32 to index
    %c0_126 = arith.constant 0 : index
    %c0_127 = arith.constant 0 : index
    %246 = vector.load %arg4[%245, %c0_126, %c0_127] : memref<8x8x128xf32, #tpu.memory_space<vmem>>, vector<1x8x128xf32>
    %247 = vector.shape_cast %246 : vector<1x8x128xf32> to vector<8x128xf32>
    %248 = vector.shape_cast %244 : vector<8x128xf32> to vector<1x8x128xf32>
    tpu.vector_store %arg4[%245, %c0_126, %c0_127], %248 {strides = array<i32>} : memref<8x8x128xf32, #tpu.memory_space<vmem>>, vector<1x8x128xf32>,
    %c6_i32 = arith.constant 6 : i32
    %c8_i32_128 = arith.constant 8 : i32
    %249 = arith.muli %arg0, %c8_i32_128 : i32
    %250 = arith.addi %249, %c6_i32 : i32
    %cst_129 = arith.constant 0.000000e+00 : f32
    %251 = vector.broadcast %cst_129 : f32 to vector<8x128xf32>
    %c0_130 = arith.constant 0 : index
    %c0_131 = arith.constant 0 : index
    %252 = vector.load %arg5[%c0_130, %c0_131] : memref<8x128xf32, #tpu.memory_space<vmem>>, vector<8x128xf32>
    tpu.vector_store %arg5[%c0_130, %c0_131], %251 {strides = array<i32>} : memref<8x128xf32, #tpu.memory_space<vmem>>, vector<8x128xf32>,
    %253 = arith.index_cast %c6_i32 : i32 to index
    %c128_132 = arith.constant 128 : index
    %254 = vector.load %arg2[%253, %c128_132] : memref<8x256xf32, #tpu.memory_space<vmem>>, vector<1x128xf32>
    %255 = arith.index_cast %c6_i32 : i32 to index
    %c0_133 = arith.constant 0 : index
    %256 = vector.load %arg2[%255, %c0_133] : memref<8x256xf32, #tpu.memory_space<vmem>>, vector<1x128xf32>
    %257 = vector.shape_cast %254 : vector<1x128xf32> to vector<1x128xf32>
    %258 = vector.broadcast %257 : vector<1x128xf32> to vector<128x128xf32>
    %259 = vector.shape_cast %256 : vector<1x128xf32> to vector<1x128xf32>
    %260 = vector.broadcast %259 : vector<1x128xf32> to vector<128x128xf32>
    %c0_i32_134 = arith.constant 0 : i32
    %261 = tpu.dynamic_rotate %258 by %c0_i32_134 dim 1 {stride = 1 : si32, stride_dimension = 0 : si32} : vector<128x128xf32>, i32 -> vector<128x128xf32>
    %c0_i32_135 = arith.constant 0 : i32
    %262 = tpu.dynamic_rotate %260 by %c0_i32_135 dim 1 {stride = 1 : si32, stride_dimension = 0 : si32} : vector<128x128xf32>, i32 -> vector<128x128xf32>
    %263 = arith.select %2, %261, %262 : vector<128x128xi1>, vector<128x128xf32>
    %c0_136 = arith.constant 0 : index
    %c0_137 = arith.constant 0 : index
    %264 = vector.load %arg5[%c0_136, %c0_137] : memref<8x128xf32, #tpu.memory_space<vmem>>, vector<8x128xf32>
    %265 = arith.index_cast %c6_i32 : i32 to index
    %c0_138 = arith.constant 0 : index
    %c0_139 = arith.constant 0 : index
    %266 = vector.load %arg3[%265, %c0_138, %c0_139] : memref<8x8x128xf32, #tpu.memory_space<vmem>>, vector<1x8x128xf32>
    %267 = vector.shape_cast %266 : vector<1x8x128xf32> to vector<8x128xf32>
    %cst_140 = arith.constant dense<0.000000e+00> : vector<8x128xf32>
    %268 = tpu.matmul %267, %263, %cst_140 {dimension_numbers = #tpu.dot_dimension_numbers<[1], [0], [0], [1], [0, 0, 1, 1], [], []>} : vector<8x128xf32>, vector<128x128xf32>, vector<8x128xf32> -> vector<8x128xf32>
    %269 = arith.addf %264, %268 : vector<8x128xf32>
    %c0_141 = arith.constant 0 : index
    %c0_142 = arith.constant 0 : index
    %270 = vector.load %arg5[%c0_141, %c0_142] : memref<8x128xf32, #tpu.memory_space<vmem>>, vector<8x128xf32>
    tpu.vector_store %arg5[%c0_141, %c0_142], %269 {strides = array<i32>} : memref<8x128xf32, #tpu.memory_space<vmem>>, vector<8x128xf32>,
    %271 = arith.index_cast %250 : i32 to index
    %272 = memref.load %arg1[%271] : memref<16xf32, #tpu.memory_space<smem>>
    %c0_143 = arith.constant 0 : index
    %c0_144 = arith.constant 0 : index
    %273 = vector.load %arg5[%c0_143, %c0_144] : memref<8x128xf32, #tpu.memory_space<vmem>>, vector<8x128xf32>
    %274 = arith.index_cast %c6_i32 : i32 to index
    %c0_145 = arith.constant 0 : index
    %c0_146 = arith.constant 0 : index
    %275 = vector.load %arg3[%274, %c0_145, %c0_146] : memref<8x8x128xf32, #tpu.memory_space<vmem>>, vector<1x8x128xf32>
    %276 = vector.shape_cast %275 : vector<1x8x128xf32> to vector<8x128xf32>
    %277 = vector.broadcast %272 : f32 to vector<8x128xf32>
    %278 = arith.mulf %276, %277 : vector<8x128xf32>
    %279 = arith.addf %273, %278 : vector<8x128xf32>
    %280 = arith.negf %279 : vector<8x128xf32>
    %281 = math.exp %280 : vector<8x128xf32>
    %cst_147 = arith.constant 1.000000e+00 : f32
    %282 = vector.broadcast %cst_147 : f32 to vector<8x128xf32>
    %283 = arith.addf %282, %281 : vector<8x128xf32>
    %284 = arith.divf %282, %283 : vector<8x128xf32>
    %285 = arith.mulf %279, %284 : vector<8x128xf32>
    %286 = arith.index_cast %c6_i32 : i32 to index
    %c0_148 = arith.constant 0 : index
    %c0_149 = arith.constant 0 : index
    %287 = vector.load %arg4[%286, %c0_148, %c0_149] : memref<8x8x128xf32, #tpu.memory_space<vmem>>, vector<1x8x128xf32>
    %288 = vector.shape_cast %287 : vector<1x8x128xf32> to vector<8x128xf32>
    %289 = vector.shape_cast %285 : vector<8x128xf32> to vector<1x8x128xf32>
    tpu.vector_store %arg4[%286, %c0_148, %c0_149], %289 {strides = array<i32>} : memref<8x8x128xf32, #tpu.memory_space<vmem>>, vector<1x8x128xf32>,
    %c7_i32 = arith.constant 7 : i32
    %c8_i32_150 = arith.constant 8 : i32
    %290 = arith.muli %arg0, %c8_i32_150 : i32
    %291 = arith.addi %290, %c7_i32 : i32
    %cst_151 = arith.constant 0.000000e+00 : f32
    %292 = vector.broadcast %cst_151 : f32 to vector<8x128xf32>
    %c0_152 = arith.constant 0 : index
    %c0_153 = arith.constant 0 : index
    %293 = vector.load %arg5[%c0_152, %c0_153] : memref<8x128xf32, #tpu.memory_space<vmem>>, vector<8x128xf32>
    tpu.vector_store %arg5[%c0_152, %c0_153], %292 {strides = array<i32>} : memref<8x128xf32, #tpu.memory_space<vmem>>, vector<8x128xf32>,
    %294 = arith.index_cast %c7_i32 : i32 to index
    %c128_154 = arith.constant 128 : index
    %295 = vector.load %arg2[%294, %c128_154] : memref<8x256xf32, #tpu.memory_space<vmem>>, vector<1x128xf32>
    %296 = arith.index_cast %c7_i32 : i32 to index
    %c0_155 = arith.constant 0 : index
    %297 = vector.load %arg2[%296, %c0_155] : memref<8x256xf32, #tpu.memory_space<vmem>>, vector<1x128xf32>
    %298 = vector.shape_cast %295 : vector<1x128xf32> to vector<1x128xf32>
    %299 = vector.broadcast %298 : vector<1x128xf32> to vector<128x128xf32>
    %300 = vector.shape_cast %297 : vector<1x128xf32> to vector<1x128xf32>
    %301 = vector.broadcast %300 : vector<1x128xf32> to vector<128x128xf32>
    %c0_i32_156 = arith.constant 0 : i32
    %302 = tpu.dynamic_rotate %299 by %c0_i32_156 dim 1 {stride = 1 : si32, stride_dimension = 0 : si32} : vector<128x128xf32>, i32 -> vector<128x128xf32>
    %c0_i32_157 = arith.constant 0 : i32
    %303 = tpu.dynamic_rotate %301 by %c0_i32_157 dim 1 {stride = 1 : si32, stride_dimension = 0 : si32} : vector<128x128xf32>, i32 -> vector<128x128xf32>
    %304 = arith.select %2, %302, %303 : vector<128x128xi1>, vector<128x128xf32>
    %c0_158 = arith.constant 0 : index
    %c0_159 = arith.constant 0 : index
    %305 = vector.load %arg5[%c0_158, %c0_159] : memref<8x128xf32, #tpu.memory_space<vmem>>, vector<8x128xf32>
    %306 = arith.index_cast %c7_i32 : i32 to index
    %c0_160 = arith.constant 0 : index
    %c0_161 = arith.constant 0 : index
    %307 = vector.load %arg3[%306, %c0_160, %c0_161] : memref<8x8x128xf32, #tpu.memory_space<vmem>>, vector<1x8x128xf32>
    %308 = vector.shape_cast %307 : vector<1x8x128xf32> to vector<8x128xf32>
    %cst_162 = arith.constant dense<0.000000e+00> : vector<8x128xf32>
    %309 = tpu.matmul %308, %304, %cst_162 {dimension_numbers = #tpu.dot_dimension_numbers<[1], [0], [0], [1], [0, 0, 1, 1], [], []>} : vector<8x128xf32>, vector<128x128xf32>, vector<8x128xf32> -> vector<8x128xf32>
    %310 = arith.addf %305, %309 : vector<8x128xf32>
    %c0_163 = arith.constant 0 : index
    %c0_164 = arith.constant 0 : index
    %311 = vector.load %arg5[%c0_163, %c0_164] : memref<8x128xf32, #tpu.memory_space<vmem>>, vector<8x128xf32>
    tpu.vector_store %arg5[%c0_163, %c0_164], %310 {strides = array<i32>} : memref<8x128xf32, #tpu.memory_space<vmem>>, vector<8x128xf32>,
    %312 = arith.index_cast %291 : i32 to index
    %313 = memref.load %arg1[%312] : memref<16xf32, #tpu.memory_space<smem>>
    %c0_165 = arith.constant 0 : index
    %c0_166 = arith.constant 0 : index
    %314 = vector.load %arg5[%c0_165, %c0_166] : memref<8x128xf32, #tpu.memory_space<vmem>>, vector<8x128xf32>
    %315 = arith.index_cast %c7_i32 : i32 to index
    %c0_167 = arith.constant 0 : index
    %c0_168 = arith.constant 0 : index
    %316 = vector.load %arg3[%315, %c0_167, %c0_168] : memref<8x8x128xf32, #tpu.memory_space<vmem>>, vector<1x8x128xf32>
    %317 = vector.shape_cast %316 : vector<1x8x128xf32> to vector<8x128xf32>
    %318 = vector.broadcast %313 : f32 to vector<8x128xf32>
    %319 = arith.mulf %317, %318 : vector<8x128xf32>
    %320 = arith.addf %314, %319 : vector<8x128xf32>
    %321 = arith.negf %320 : vector<8x128xf32>
    %322 = math.exp %321 : vector<8x128xf32>
    %cst_169 = arith.constant 1.000000e+00 : f32
    %323 = vector.broadcast %cst_169 : f32 to vector<8x128xf32>
    %324 = arith.addf %323, %322 : vector<8x128xf32>
    %325 = arith.divf %323, %324 : vector<8x128xf32>
    %326 = arith.mulf %320, %325 : vector<8x128xf32>
    %327 = arith.index_cast %c7_i32 : i32 to index
    %c0_170 = arith.constant 0 : index
    %c0_171 = arith.constant 0 : index
    %328 = vector.load %arg4[%327, %c0_170, %c0_171] : memref<8x8x128xf32, #tpu.memory_space<vmem>>, vector<1x8x128xf32>
    %329 = vector.shape_cast %328 : vector<1x8x128xf32> to vector<8x128xf32>
    %330 = vector.shape_cast %326 : vector<8x128xf32> to vector<1x8x128xf32>
    tpu.vector_store %arg4[%327, %c0_170, %c0_171], %330 {strides = array<i32>} : memref<8x8x128xf32, #tpu.memory_space<vmem>>, vector<1x8x128xf32>,
    %c8_i32_172 = arith.constant 8 : i32
    return
  }
  func.func @transform_0(%arg0: i32) -> i32 {
    %c0_i32 = arith.constant 0 : i32
    %c0_i32_0 = arith.constant 0 : i32
    return %c0_i32 : i32
  }
  func.func @transform_1(%arg0: i32) -> (i32, i32) {
    %c0_i32 = arith.constant 0 : i32
    %c0_i32_0 = arith.constant 0 : i32
    return %arg0, %c0_i32 : i32, i32
  }
  func.func @transform_2(%arg0: i32) -> (i32, i32, i32) {
    %c0_i32 = arith.constant 0 : i32
    %c0_i32_0 = arith.constant 0 : i32
    %c0_i32_1 = arith.constant 0 : i32
    return %arg0, %c0_i32, %c0_i32_0 : i32, i32, i32
  }
  func.func @transform_3(%arg0: i32) -> (i32, i32, i32) {
    %c0_i32 = arith.constant 0 : i32
    %c0_i32_0 = arith.constant 0 : i32
    %c0_i32_1 = arith.constant 0 : i32
    return %arg0, %c0_i32, %c0_i32_0 : i32, i32, i32
  }
}

</mosaic_0001>

<bundles_post_ra>
// kernel: tpu_custom_call.1
= control target key start
LH: loop header
LB: loop body
LE: loop exit
PB: predicated region body
PF: predicated region fallthrough
CT: control target
= control target key end

     0   :  { %8 = vsyncpa [#allocation6], 0  ;;  %s4418_s0 = inlined_call_operand.hbm [shape: f32[16], index: 0, kind: input, shape index: {}]   ;;  %s4419_s1 = inlined_call_operand.hbm [shape: f32[16,256], index: 1, kind: input, shape index: {}]   ;;  %s4420_s2 = inlined_call_operand.hbm [shape: f32[16,8,128], index: 2, kind: input, shape index: {}]   ;;  %s4421_s3 = inlined_call_operand.hbm [shape: f32[16,8,128], index: 3, kind: output, shape index: {}]  }
   0x1   :  { %9 = vsyncpa [#allocation4], 0 }
   0x2   :  { %11 = vsyncpa [#allocation4 + $0x1], 0 }
   0x3   :  { %12 = vsyncpa [#allocation9], 0 }
   0x4   :  { %14 = vsyncpa [#allocation9 + $0x1], 0 }
   0x5   :  { %15 = vsyncpa [#allocation5], 0 }
   0x6   :  { %17 = vsyncpa [#allocation5 + $0x1], 0  ;;  %s3056_s12 = smov 0   ;;  %s3058_s13 = smov 0  }
   0x7   :  { %s3060_s14 = smov 0   ;;  %s3062_s15 = smov 0  }
   0x8 LB: > { %s3077_s16 = sadd.s32 4294967295, %s3008_s15   ;;  %s2284_s17 = sadd.s32 4294967294, %s3008_s15   ;;  %s3008_s15 = sphi %s3062_s15, %s4514_s15   ;;  %s3004_s14 = sphi %s3060_s14, %s4513_s14   ;;  %s3000_s13 = sphi %s3058_s13, %s4512_s13   ;;  %s2996_s12 = sphi %s3056_s12, %s4511_s12  }
   0x9   : > { %s3081_s18 = sadd.s32 1, %s3008_s15   ;;  %s51_s19 = sadd.s32 1, %s3004_s14 }
   0xa   : > { %s48_s20 = ssub.s32 %s3008_s15, %s3081_s18  ;;  %p58_p0 = scmp.ne.s32.totalorder %s3004_s14, %s3000_s13 }
   0xb   : > { %p49_p1 = scmp.eq.s32.totalorder %s48_s20, 0  ;;  %p64_p2 = scmp.ne.s32.totalorder %s3000_s13, %s2996_s12 }
   0xc   : > { %p4422_p3 = scmp.eq.s32.totalorder %s3077_s16, 0  ;;  %p114_p4 = scmp.eq.s32.totalorder %s3077_s16, 1 }
   0xd   : > { %s3093_s21 = scalar_select %p49_p1, %s3004_s14, %s51_s19  }
   0xe   : > { %p3097_p5 = por %p4422_p3, %p64_p2  ;;  %p3104_p6 = por %p114_p4, %p58_p0 }
   0xf   : > { %p120_p7 = scmp.eq.s32.totalorder %s2284_s17, 1  ;;  %p2285_p8 = scmp.ge.s32.totalorder %s3008_s15, 1 }
  0x10   : > { %s4453_s22 = scalar_select %p3097_p5, 1, 0 }
  0x11   : > { %s4454_s23 = scalar_select %p3104_p6, 1, 0 }
  0x12   : > { %p127_p9 = scmp.lt.s32.totalorder %s3008_s15, 3  ;;  %p3110_p10 = por %p120_p7, %p64_p2 }
  0x13   : > { %p59_p13 = scmp.eq.s32.totalorder %s3008_s15, 0  ;;  %p2779_p1 = scmp.lt.s32.totalorder %s3008_s15, 2 }
  0x14   : > { %s4455_s24 = scalar_select %p3110_p10, 1, 0 }
  0x15   : > { %p3114_p11 = pnand %p2285_p8, %p127_p9  ;;  %s3124_s26 = sand.u32 1, %s3004_s14  }
  0x16   : > { %p60_p2 = por %p59_p13, %p58_p0  ;;  %s2288_s27 = sshll.u32 %s3124_s26, 4 }
  0x17   : > { %s4456_s25 = scalar_select %p3114_p11, 1, 0 }
  0x18   : > { %p2763_p4 = pneg %p3114_p11  ;;  %s2334_s28 = sshll.u32 %s3008_s15, 8 }
  0x19   : > { %s3136_s4 = scalar_lea.hbm %s4419_s1, %s2334_s28  ;;  %s3010_s5 = smov [#allocation3]  }
  0x1a   : > { %p2764_p7 = pnand %p2763_p4, %p4422_p3  ;;  %s153_s8 = scalar_lea.vmem [#allocation7], %s2288_s27 }
  0x1b   : > { %s161_s9 = sshll.u32 %s153_s8, 4  ;;  %p3141_p0 = pnand %p2779_p1, %p60_p2  ;;  %s162_s9 = int_to_ptr.vmem [resolvable:$true] %s161_s9 }
  0x1c   : > { %2766 = dma.hbm_to_smem (!%p2764_p7), %s4418_s0, 16, %s3010_s5, [#allocation6]  }
  0x1d   : > { %s2291_s11 = sshll.u32 %s3124_s26, 6  ;;  %s150_s17 = scalar_lea.sflag [#allocation4], %s3124_s26 }
  0x1e   : > { %s2880_s19 = scalar_lea.hbm %s3136_s4, 256  ;;  %p2882_p9 = pneg %p3141_p0 }
  0x1f   : > { %p2881_p8 = scmp.ne.s32.totalorder %s3136_s4, %s2880_s19  ;;  %s2885_s28 = scalar_lea.hbm %s4419_s1, 512 }
  0x20   : > { %p2886_p1 = scmp.lt.s32.totalorder %s3136_s4, %s4419_s1  ;;  %p2887_p2 = scmp.lt.s32.totalorder %s2885_s28, %s2880_s19 }
  0x21   : > { %p2883_p13 = pnand %p2882_p9, %p2881_p8 }
  0x22   : > { %p2888_p7 = por %p2887_p2, %p2886_p1 }
  0x23   : > { %p2884_p4 = pneg %p2883_p13 }
  0x25   : > { %p2889_p12 = pnand %p2888_p7, %p2884_p4 }
  0x27   : > { %2892 = shalt.err (!%p2889_p12)
}
  0x28   : > { %s2893_s5 = scalar_lea.vmem %s162_s9, 256  ;;  %s3011_s6 = smov [#allocation7]  }
  0x29   : > { %p2894_p3 = scmp.ne.s32.totalorder %s162_s9, %s2893_s5  ;;  %s2898_s7 = sshll.u32 %s3011_s6, 4  ;;  %s2899_s7 = int_to_ptr.vmem [resolvable:$false] %s2898_s7 }
  0x2a   : > { %s2900_s8 = scalar_lea.vmem %s2899_s7, 512  ;;  %p2901_p13 = scmp.lt.s32.totalorder %s162_s9, %s2899_s7 }
  0x2b   : > { %p2896_p10 = pnand %p2894_p3, %p2882_p9  ;;  %p2902_p6 = scmp.lt.s32.totalorder %s2900_s8, %s2893_s5 }
  0x2d   : > { %p2897_p8 = pneg %p2896_p10  ;;  %p2903_p5 = por %p2902_p6, %p2901_p13 }
  0x2f   : > { %p2904_p11 = pnand %p2903_p5, %p2897_p8 }
  0x31   : > { %2907 = shalt.err (!%p2904_p11)
}
  0x32   : > { %2770 = dma.hbm_to_vmem [thread:$0]  (!%p3141_p0), %s3136_s4, 256, %s162_s9, %s150_s17  }
  0x33   : > { %s2335_s19 = sshll.u32 %s3008_s15, 10  ;;  %s172_s29 = scalar_lea.vmem [#allocation8], %s2291_s11 }
  0x34   : > { %s3171_s28 = scalar_lea.hbm %s4420_s2, %s2335_s19  ;;  %s179_s30 = sshll.u32 %s172_s29, 4  ;;  %s3175_s30 = int_to_ptr.vmem [resolvable:$true] %s179_s30 }
  0x35   : > { %s169_s5 = scalar_lea.sflag [#allocation9], %s3124_s26  ;;  %s2908_s6 = scalar_lea.hbm %s3171_s28, 1024 }
  0x36   : > { %p2909_p3 = scmp.ne.s32.totalorder %s3171_s28, %s2908_s6  ;;  %s2913_s17 = scalar_lea.hbm %s4420_s2, 2048 }
  0x37   : > { %p2914_p10 = scmp.lt.s32.totalorder %s3171_s28, %s4420_s2  ;;  %p2915_p11 = scmp.lt.s32.totalorder %s2913_s17, %s2908_s6 }
  0x38   : > { %p2911_p5 = pnand %p2909_p3, %p2882_p9 }
  0x39   : > { %p2916_p12 = por %p2915_p11, %p2914_p10 }
  0x3a   : > { %p2912_p6 = pneg %p2911_p5 }
  0x3c   : > { %p2917_p4 = pnand %p2916_p12, %p2912_p6 }
  0x3e   : > { %2920 = shalt.err (!%p2917_p4)
}
  0x3f   : > { %s2921_s11 = scalar_lea.vmem %s3175_s30, 1024  ;;  %s3012_s19 = smov [#allocation8]  }
  0x40   : > { %p2922_p1 = scmp.ne.s32.totalorder %s3175_s30, %s2921_s11  ;;  %s2926_s20 = sshll.u32 %s3012_s19, 4  ;;  %s2927_s20 = int_to_ptr.vmem [resolvable:$false] %s2926_s20 }
  0x41   : > { %s2928_s27 = scalar_lea.vmem %s2927_s20, 2048  ;;  %p2929_p8 = scmp.lt.s32.totalorder %s3175_s30, %s2927_s20 }
  0x42   : > { %p2924_p2 = pnand %p2922_p1, %p2882_p9  ;;  %p2930_p13 = scmp.lt.s32.totalorder %s2928_s27, %s2921_s11 }
  0x44   : > { %p2925_p7 = pneg %p2924_p2  ;;  %p2931_p3 = por %p2930_p13, %p2929_p8 }
  0x46   : > { %p2932_p5 = pnand %p2931_p3, %p2925_p7 }
  0x48   : > { %2935 = shalt.err (!%p2932_p5)
}
  0x49   : > { %s3013_s29 = smov 128   ;;  %s3014_s6 = smov 8  }
  0x4a   : > { %2773 = dma.hbm_to_vmem [thread:$0]  (!%p3141_p0), %s3171_s28, 1024, %s3175_s30, %s169_s5, %s3013_s29, %s3013_s29, %s3014_s6  }
  0x4b   : > { %p4458_p9 = scmp.ne.s32.totalorder %s4456_s25, 0 }
  0x4c   : > { %p4459_p6 = scmp.eq.s32.totalorder (!%p4458_p9), %s3077_s16, 0 }
  0x4d   : > { %191 = sbr.rel (%p4458_p9) target bundleno = 962 (0x3c2), region = 32 }
  0x52   : > { %2979 = dma.done.wait (%p4459_p6), [#allocation6], 16   ;;  %p4460_p10 = pmov %p4459_p6 }
  0x53   : > { %s3209_s4 = sand.u32 1, %s3000_s13   ;;  %p4461_p0 = scmp.ne.s32.totalorder %s4453_s22, 0 }
  0x54   : > { %2981 = vsyncadd (%p4460_p10), [#allocation6], 4294967280  ;;  %s2296_s9 = sshll.u32 %s3209_s4, 4  ;;  %s198_s17 = scalar_lea.sflag [#allocation4], %s3209_s4 }
  0x55   : > { %s3213_s10 = scalar_lea.vmem [#allocation7], %s2296_s9 }
  0x56   : > { %2983 = dma.done.wait (%p4461_p0), %s198_s17, 256  }
  0x57   : > { %2985 = vsyncadd (%p4461_p0), %s198_s17, 4294967040  ;;  %s4426_s25 = sshll.u32 %s3209_s4, 6  ;;  %s207_s26 = scalar_lea.sflag [#allocation9], %s3209_s4 }
  0x58   : > { %s3223_s28 = scalar_lea.vmem [#allocation8], %s4426_s25 }
  0x59   : > { %2987 = dma.done.wait (%p4461_p0), %s207_s26, 1024  }
  0x5a   : > { %2989 = vsyncadd (%p4461_p0), %s207_s26, 4294966272 }
  0x5b   : > { %215 = sfence }
  0x5c   : > { %v278_v0 = vld [vmem:[%s3213_s10 + $0x8] ss:$0 sm:$0xff]  ;;  %s3015_s30 = smov 272   ;;  %s3016_s5 = smov 256   ;;  %v279_v1 = vld [vmem:[%s3213_s10] ss:$0 sm:$0xff]  ;;  %v241_v35 = vlaneseq }
  0x5d   : > { %289 = vrot.lane.b32.xlu1 %v278_v0, %s3015_s30  ;;  %281 = vrot.lane.b32.xlu0 %v278_v0, %s3016_s5  ;;  %s3017_s7 = smov 280   ;;  %s4435_s8 = smov 264   ;;  %v3031_v2 = vmov 0.0   ;;  %v512_v3 = vld [vmem:[%s3213_s10 + $0x9] ss:$0 sm:$0xff]  ;;  %vm4439_vm0 = vmmov 0  }
  0x5e   : > { %s3019_s11 = smov 296   ;;  %s4437_s22 = smov 288   ;;  %2473 = vmatprep.subr.mxu0 %v3031_v2  ;;  %2508 = vmatprep.subr.mxu1 %v3031_v2  ;;  %v513_v4 = vld [vmem:[%s3213_s10 + $0x1] ss:$0 sm:$0xff]  ;;  %v3316_v11 = vld [vmem:[%s3213_s10 + $0x2] ss:$0 sm:$0xff] }
  0x5f   : > { %s4431_s19 = smov 312   ;;  %s4427_s20 = smov 304   ;;  %2505 = vmatprep.mubr.msk.f32.mxu0 %vm4439_vm0, %v3031_v2  ;;  %2540 = vmatprep.mubr.msk.f32.mxu1 %vm4439_vm0, %v3031_v2  ;;  %v3319_v12 = vld [vmem:[%s3213_s10 + $0xa] ss:$0 sm:$0xff]  ;;  %v3330_v15 = vld [vmem:[%s3213_s10 + $0x3] ss:$0 sm:$0xff] }
  0x60   : > { %s3023_s27 = smov 328   ;;  %s4443_s29 = smov 320   ;;  %v3333_v16 = vld [vmem:[%s3213_s10 + $0xb] ss:$0 sm:$0xff]  ;;  %v3403_v38 = vshrl.u32 %v241_v35, 7  ;;  %v3410_v42 = vand.u32 127, %v241_v35 }
  0x61   : > { %293 = vrot.lane.b32.xlu1 %v278_v0, %s3017_s7  ;;  %285 = vrot.lane.b32.xlu0 %v278_v0, %s4435_s8  ;;  %s3025_s6 = smov 344   ;;  %s4447_s9 = smov 336  }
  0x62   : > { %s4433_s17 = smov 360   ;;  %s3028_s26 = smov 352   ;;  %v259_v39 = vadd.s32 120, %v3403_v38  ;;  %v258_v43 = vadd.s32 112, %v3403_v38  ;;  %v257_v45 = vadd.s32 104, %v3403_v38  ;;  %v256_v50 = vadd.s32 96, %v3403_v38 }
  0x63   : > { %s4429_s25 = smov 376   ;;  %v255_v52 = vadd.s32 88, %v3403_v38  ;;  %v254_v57 = vadd.s32 80, %v3403_v38  ;;  %v253_v60 = vadd.s32 72, %v3403_v38  ;;  %v250_v35 = vadd.s32 48, %v3403_v38  ;;  %p4508_p12 = scmp.ne.s32.totalorder %s4454_s23, 0 }
  0x64   : > { %vm3418_vm1 = vcmp.ge.s32.totalorder %v3410_v42, %v259_v39  ;;  %vm3426_vm2 = vcmp.ge.s32.totalorder %v3410_v42, %v258_v43  ;;  %vm3436_vm3 = vcmp.ge.s32.totalorder %v3410_v42, %v257_v45  ;;  %vm3449_vm4 = vcmp.ge.s32.totalorder %v3410_v42, %v256_v50 }
  0x65   : > { %301 = vrot.lane.b32.xlu1 %v278_v0, %s3019_s11  ;;  %297 = vrot.lane.b32.xlu0 %v278_v0, %s4437_s22  ;;  %vm3463_vm5 = vcmp.ge.s32.totalorder %v3410_v42, %v255_v52  ;;  %vm3477_vm6 = vcmp.ge.s32.totalorder %v3410_v42, %v254_v57  ;;  %vm3491_vm7 = vcmp.ge.s32.totalorder %v3410_v42, %v253_v60 }
  0x66   : > { %vm3535_vm10 = vcmp.ge.s32.totalorder %v3410_v42, %v250_v35  ;;  %vm3616_vm0 = vcmp.ge.s32.totalorder %v3410_v42, %v3403_v38 }
  0x69   : > { %309 = vrot.lane.b32.xlu1 %v278_v0, %s4431_s19  ;;  %305 = vrot.lane.b32.xlu0 %v278_v0, %s4427_s20  ;;  %s3030_s20 = smov 368  }
  0x6d   : > { %317 = vrot.lane.b32.xlu1 %v278_v0, %s3023_s27  ;;  %313 = vrot.lane.b32.xlu0 %v278_v0, %s4443_s29 }
  0x71   : > { %325 = vrot.lane.b32.xlu1 %v278_v0, %s3025_s6  ;;  %321 = vrot.lane.b32.xlu0 %v278_v0, %s4447_s9 }
  0x75   : > { %333 = vrot.lane.b32.xlu1 %v278_v0, %s4433_s17  ;;  %329 = vrot.lane.b32.xlu0 %v278_v0, %s3028_s26 }
  0x79   : > { %341 = vrot.lane.b32.xlu1 %v278_v0, %s4429_s25  ;;  %337 = vrot.lane.b32.xlu0 %v278_v0, %s3030_s20  ;;  %s4462_s25 = smov 304  }
  0x7d   : > { %348 = vrot.lane.b32.xlu1 %v279_v1, %s4435_s8  ;;  %344 = vrot.lane.b32.xlu0 %v279_v1, %s3016_s5 }
  0x81   : > { %356 = vrot.lane.b32.xlu1 %v279_v1, %s3017_s7  ;;  %352 = vrot.lane.b32.xlu0 %v279_v1, %s3015_s30 }
  0x85   : > { %364 = vrot.lane.b32.xlu1 %v279_v1, %s3019_s11  ;;  %360 = vrot.lane.b32.xlu0 %v279_v1, %s4437_s22 }
  0x89   : > { %372 = vrot.lane.b32.xlu1 %v279_v1, %s4431_s19  ;;  %368 = vrot.lane.b32.xlu0 %v279_v1, %s4462_s25  ;;  %s4463_s19 = smov 376  }
  0x8d   : > { %380 = vrot.lane.b32.xlu1 %v279_v1, %s3023_s27  ;;  %376 = vrot.lane.b32.xlu0 %v279_v1, %s4443_s29 }
  0x91   : > { %388 = vrot.lane.b32.xlu1 %v279_v1, %s3025_s6  ;;  %384 = vrot.lane.b32.xlu0 %v279_v1, %s4447_s9 }
  0x95   : > { %396 = vrot.lane.b32.xlu1 %v279_v1, %s4433_s17  ;;  %392 = vrot.lane.b32.xlu0 %v279_v1, %s3028_s26  ;;  %s4464_s17 = smov 312  }
  0x99   : > { %404 = vrot.lane.b32.xlu1 %v279_v1, %s4463_s19  ;;  %400 = vrot.lane.b32.xlu0 %v279_v1, %s3030_s20  ;;  %v252_v1 = vadd.s32 64, %v3403_v38 }
  0x9b   : > { %vm3505_vm8 = vcmp.ge.s32.totalorder %v3410_v42, %v252_v1 }
  0x9d   : > { %519 = vrot.lane.b32.xlu1 %v512_v3, %s4435_s8  ;;  %515 = vrot.lane.b32.xlu0 %v512_v3, %s3016_s5  ;;  %s4465_s8 = smov 360  }
  0xa1   : > { %527 = vrot.lane.b32.xlu1 %v512_v3, %s3017_s7  ;;  %523 = vrot.lane.b32.xlu0 %v512_v3, %s3015_s30 }
  0xa5   : > { %535 = vrot.lane.b32.xlu1 %v512_v3, %s3019_s11  ;;  %531 = vrot.lane.b32.xlu0 %v512_v3, %s4437_s22 }
  0xa9   : > { %543 = vrot.lane.b32.xlu1 %v512_v3, %s4464_s17  ;;  %539 = vrot.lane.b32.xlu0 %v512_v3, %s4462_s25 }
  0xad   : > { %551 = vrot.lane.b32.xlu1 %v512_v3, %s3023_s27  ;;  %547 = vrot.lane.b32.xlu0 %v512_v3, %s4443_s29 }
  0xb1   : > { %559 = vrot.lane.b32.xlu1 %v512_v3, %s3025_s6  ;;  %555 = vrot.lane.b32.xlu0 %v512_v3, %s4447_s9 }
  0xb5   : > { %567 = vrot.lane.b32.xlu1 %v512_v3, %s4465_s8  ;;  %563 = vrot.lane.b32.xlu0 %v512_v3, %s3028_s26 }
  0xb9   : > { %575 = vrot.lane.b32.xlu1 %v512_v3, %s4463_s19  ;;  %571 = vrot.lane.b32.xlu0 %v512_v3, %s3030_s20 }
  0xbd   : > { %634 = vrot.lane.b32.xlu1 %v513_v4, %s3030_s20  ;;  %638 = vrot.lane.b32.xlu0 %v513_v4, %s4463_s19 }
  0xc1   : > { %626 = vrot.lane.b32.xlu1 %v513_v4, %s3028_s26  ;;  %630 = vrot.lane.b32.xlu0 %v513_v4, %s4465_s8 }
  0xc5   : > { %618 = vrot.lane.b32.xlu1 %v513_v4, %s4447_s9  ;;  %622 = vrot.lane.b32.xlu0 %v513_v4, %s3025_s6 }
  0xc9   : > { %610 = vrot.lane.b32.xlu1 %v513_v4, %s4443_s29  ;;  %614 = vrot.lane.b32.xlu0 %v513_v4, %s3023_s27 }
  0xcd   : > { %602 = vrot.lane.b32.xlu1 %v513_v4, %s4462_s25  ;;  %606 = vrot.lane.b32.xlu0 %v513_v4, %s4464_s17 }
  0xcf   : > { %v3293_v5 = vpop.permute.xlu1 %289  ;;  %v3295_v6 = vpop.permute.xlu0 %281 }
  0xd1   : > { %594 = vrot.lane.b32.xlu1 %v513_v4, %s4437_s22  ;;  %598 = vrot.lane.b32.xlu0 %v513_v4, %s3019_s11  ;;  %s4466_s22 = smov 264  }
  0xd3   : > { %v3303_v7 = vpop.permute.xlu1 %293  ;;  %v3305_v8 = vpop.permute.xlu0 %285 }
  0xd5   : > { %586 = vrot.lane.b32.xlu1 %v513_v4, %s3015_s30  ;;  %590 = vrot.lane.b32.xlu0 %v513_v4, %s3017_s7 }
  0xd7   : > { %v3309_v9 = vpop.permute.xlu1 %301  ;;  %v3311_v10 = vpop.permute.xlu0 %297 }
  0xd9   : > { %578 = vrot.lane.b32.xlu1 %v513_v4, %s3016_s5  ;;  %582 = vrot.lane.b32.xlu0 %v513_v4, %s4466_s22 }
  0xdb   : > { %v3321_v13 = vpop.permute.xlu1 %309  ;;  %v3323_v14 = vpop.permute.xlu0 %305 }
  0xdd   : > { %874 = vrot.lane.b32.xlu1 %v3316_v11, %s4463_s19  ;;  %811 = vrot.lane.b32.xlu0 %v3319_v12, %s4463_s19 }
  0xdf   : > { %v3335_v17 = vpop.permute.xlu1 %317  ;;  %v3337_v18 = vpop.permute.xlu0 %313 }
  0xe1   : > { %1110 = vrot.lane.b32.xlu1 %v3330_v15, %s4463_s19  ;;  %1047 = vrot.lane.b32.xlu0 %v3333_v16, %s4463_s19 }
  0xe3   : > { %v3343_v19 = vpop.permute.xlu1 %325  ;;  %v3345_v20 = vpop.permute.xlu0 %321 }
  0xe5   : > { %870 = vrot.lane.b32.xlu1 %v3316_v11, %s3030_s20  ;;  %807 = vrot.lane.b32.xlu0 %v3319_v12, %s3030_s20 }
  0xe7   : > { %v3351_v21 = vpop.permute.xlu1 %333  ;;  %v3353_v22 = vpop.permute.xlu0 %329 }
  0xe9   : > { %1106 = vrot.lane.b32.xlu1 %v3330_v15, %s3030_s20  ;;  %1043 = vrot.lane.b32.xlu0 %v3333_v16, %s3030_s20 }
  0xeb   : > { %v342_v23 = vpop.permute.xlu1 %341  ;;  %v338_v24 = vpop.permute.xlu0 %337 }
  0xed   : > { %866 = vrot.lane.b32.xlu1 %v3316_v11, %s4465_s8  ;;  %803 = vrot.lane.b32.xlu0 %v3319_v12, %s4465_s8 }
  0xef   : > { %v3363_v25 = vpop.permute.xlu1 %348  ;;  %v3365_v26 = vpop.permute.xlu0 %344 }
  0xf1   : > { %1102 = vrot.lane.b32.xlu1 %v3330_v15, %s4465_s8  ;;  %1039 = vrot.lane.b32.xlu0 %v3333_v16, %s4465_s8 }
  0xf3   : > { %v3371_v27 = vpop.permute.xlu1 %356  ;;  %v3373_v28 = vpop.permute.xlu0 %352 }
  0xf5   : > { %862 = vrot.lane.b32.xlu1 %v3316_v11, %s3028_s26  ;;  %799 = vrot.lane.b32.xlu0 %v3319_v12, %s3028_s26 }
  0xf7   : > { %v3379_v29 = vpop.permute.xlu1 %364  ;;  %v3381_v30 = vpop.permute.xlu0 %360 }
  0xf9   : > { %1098 = vrot.lane.b32.xlu1 %v3330_v15, %s3028_s26  ;;  %1035 = vrot.lane.b32.xlu0 %v3333_v16, %s3028_s26 }
  0xfb   : > { %v3387_v31 = vpop.permute.xlu1 %372  ;;  %v3389_v32 = vpop.permute.xlu0 %368 }
  0xfd   : > { %858 = vrot.lane.b32.xlu1 %v3316_v11, %s3025_s6  ;;  %795 = vrot.lane.b32.xlu0 %v3319_v12, %s3025_s6 }
  0xff   : > { %v3395_v33 = vpop.permute.xlu1 %380  ;;  %v3397_v34 = vpop.permute.xlu0 %376 }
 0x101   : > { %1094 = vrot.lane.b32.xlu1 %v3330_v15, %s3025_s6  ;;  %1031 = vrot.lane.b32.xlu0 %v3333_v16, %s3025_s6 }
 0x103   : > { %v389_v36 = vpop.permute.xlu1 %388  ;;  %v385_v37 = vpop.permute.xlu0 %384 }
 0x104   : > { %v417_v3 = vsel %vm3463_vm5, %v3343_v19, %v389_v36  ;;  %v416_v19 = vsel %vm3477_vm6, %v3345_v20, %v385_v37  ;;  %v415_v36 = vsel %vm3491_vm7, %v3335_v17, %v3395_v33  ;;  %v4483_v20 = vmov 0 }
 0x105   : > { %854 = vrot.lane.b32.xlu1 %v3316_v11, %s4447_s9  ;;  %791 = vrot.lane.b32.xlu0 %v3319_v12, %s4447_s9  ;;  %v249_v37 = vadd.s32 40, %v3403_v38  ;;  %v414_v17 = vsel %vm3505_vm8, %v3337_v18, %v3397_v34  ;;  %v4487_v18 = vmov 0  ;;  %v247_v34 = vadd.s32 24, %v3403_v38 }
 0x107   : > { %v397_v40 = vpop.permute.xlu1 %396  ;;  %v393_v41 = vpop.permute.xlu0 %392  ;;  %vm3550_vm11 = vcmp.ge.s32.totalorder %v3410_v42, %v249_v37  ;;  %vm3580_vm13 = vcmp.ge.s32.totalorder %v3410_v42, %v247_v34 }
 0x108   : > { %v419_v58 = vsel %vm3436_vm3, %v3351_v21, %v397_v40  ;;  %v418_v63 = vsel %vm3449_vm4, %v3353_v22, %v393_v41  ;;  %v251_v21 = vadd.s32 56, %v3403_v38  ;;  %v248_v41 = vadd.s32 32, %v3403_v38 }
 0x109   : > { %1090 = vrot.lane.b32.xlu1 %v3330_v15, %s4447_s9  ;;  %1027 = vrot.lane.b32.xlu0 %v3333_v16, %s4447_s9  ;;  %v4488_v18 = vsel %vm3550_vm11, 4294967295, %v4487_v18 }
 0x10a   : > { %vm3520_vm9 = vcmp.ge.s32.totalorder %v3410_v42, %v251_v21  ;;  %vm3565_vm12 = vcmp.ge.s32.totalorder %v3410_v42, %v248_v41 }
 0x10b   : > { %v405_v46 = vpop.permute.xlu1 %404  ;;  %v401_v47 = vpop.permute.xlu0 %400  ;;  %v4484_v20 = vsel %vm3520_vm9, 4294967295, %v4483_v20  ;;  %v413_v43 = vsel %vm3520_vm9, %v3321_v13, %v3387_v31  ;;  %v412_v13 = vsel %vm3535_vm10, %v3323_v14, %v3389_v32  ;;  %v4491_v14 = vmov 0 }
 0x10c   : > { %v421_v48 = vsel %vm3418_vm1, %v342_v23, %v405_v46  ;;  %v420_v55 = vsel %vm3426_vm2, %v338_v24, %v401_v47  ;;  %v246_v47 = vadd.s32 16, %v3403_v38  ;;  %v4492_v14 = vsel %vm3580_vm13, 4294967295, %v4491_v14 }
 0x10d   : > { %850 = vrot.lane.b32.xlu1 %v3316_v11, %s3023_s27  ;;  %787 = vrot.lane.b32.xlu0 %v3319_v12, %s3023_s27  ;;  %v245_v32 = vadd.s32 8, %v3403_v38  ;;  %v406_v38 = vsel %vm3616_vm0, %v3295_v6, %v3365_v26 }
 0x10e   : > { %2474 = vmatpush3.msra.mxu0 %v421_v48  ;;  %v411_v48 = vsel %vm3550_vm11, %v3309_v9, %v3379_v29  ;;  %v410_v9 = vsel %vm3565_vm12, %v3311_v10, %v3381_v30  ;;  %vm3591_vm14 = vcmp.ge.s32.totalorder %v3410_v42, %v246_v47  ;;  %v4495_v10 = vmov 0 }
 0x10f   : > { %2475 = vmatprep.subr.mxu0 %v3031_v2  ;;  %v3442_v53 = vpop.permute.xlu1 %519  ;;  %v3444_v54 = vpop.permute.xlu0 %515  ;;  %vm3605_vm15 = vcmp.ge.s32.totalorder %v3410_v42, %v245_v32  ;;  %v423_v42 = vld [vmem:[%s3223_s28] sm:$0xff] }
 0x110   : > { %2476 = vmatpush3.msra.mxu0 %v420_v55  ;;  %v409_v55 = vsel %vm3580_vm13, %v3303_v7, %v3371_v27  ;;  %v4496_v10 = vsel %vm3605_vm15, 4294967295, %v4495_v10  ;;  %v407_v27 = vsel %vm3605_vm15, %v3305_v8, %v3363_v25  ;;  %vm4499_vm15 = vmmov 0  }
 0x111   : > { %2477 = vmatprep.subr.mxu0 %v3031_v2  ;;  %1086 = vrot.lane.b32.xlu1 %v3330_v15, %s3023_s27 }
 0x112   : > { %1023 = vrot.lane.b32.xlu0 %v3333_v16, %s3023_s27  ;;  %2478 = vmatpush3.msra.mxu0 %v419_v58  ;;  %v408_v58 = vsel %vm3591_vm14, %v3293_v5, %v3373_v28 }
 0x113   : > { %2479 = vmatprep.subr.mxu0 %v3031_v2  ;;  %v3469_v61 = vpop.permute.xlu1 %527  ;;  %v3471_v62 = vpop.permute.xlu0 %523 }
 0x114   : > { %2480 = vmatpush3.msra.mxu0 %v418_v63 }
 0x115   : > { %2481 = vmatprep.subr.mxu0 %v3031_v2  ;;  %846 = vrot.lane.b32.xlu1 %v3316_v11, %s4443_s29 }
 0x116   : > { %783 = vrot.lane.b32.xlu0 %v3319_v12, %s4443_s29  ;;  %2482 = vmatpush3.msra.mxu0 %v417_v3 }
 0x117   : > { %2483 = vmatprep.subr.mxu0 %v3031_v2  ;;  %v3497_v22 = vpop.permute.xlu1 %535  ;;  %v3499_v23 = vpop.permute.xlu0 %531 }
 0x118   : > { %2484 = vmatpush3.msra.mxu0 %v416_v19 }
 0x119   : > { %2485 = vmatprep.subr.mxu0 %v3031_v2  ;;  %1082 = vrot.lane.b32.xlu1 %v3330_v15, %s4443_s29 }
 0x11a   : > { %1019 = vrot.lane.b32.xlu0 %v3333_v16, %s4443_s29  ;;  %2486 = vmatpush3.msra.mxu0 %v415_v36  ;;  %s4500_s29 = smov 288  }
 0x11b   : > { %2487 = vmatprep.subr.mxu0 %v3031_v2  ;;  %v3526_v39 = vpop.permute.xlu1 %543  ;;  %v3528_v40 = vpop.permute.xlu0 %539 }
 0x11c   : > { %2488 = vmatpush3.msra.mxu0 %v414_v17 }
 0x11d   : > { %2489 = vmatprep.subr.mxu0 %v3031_v2  ;;  %842 = vrot.lane.b32.xlu1 %v3316_v11, %s4464_s17 }
 0x11e   : > { %779 = vrot.lane.b32.xlu0 %v3319_v12, %s4464_s17  ;;  %2490 = vmatpush3.msra.mxu0 %v413_v43 }
 0x11f   : > { %2491 = vmatprep.subr.mxu0 %v3031_v2  ;;  %v3556_v45 = vpop.permute.xlu1 %551  ;;  %v3558_v46 = vpop.permute.xlu0 %547 }
 0x120   : > { %2492 = vmatpush3.msra.mxu0 %v412_v13 }
 0x121   : > { %2493 = vmatprep.subr.mxu0 %v3031_v2  ;;  %1078 = vrot.lane.b32.xlu1 %v3330_v15, %s4464_s17 }
 0x122   : > { %1015 = vrot.lane.b32.xlu0 %v3333_v16, %s4464_s17  ;;  %2494 = vmatpush3.msra.mxu0 %v411_v48 }
 0x123   : > { %2495 = vmatprep.subr.mxu0 %v3031_v2  ;;  %v560_v50 = vpop.permute.xlu1 %559  ;;  %v556_v52 = vpop.permute.xlu0 %555 }
 0x124   : > { %2496 = vmatpush3.msra.mxu0 %v410_v9 }
 0x125   : > { %2497 = vmatprep.subr.mxu0 %v3031_v2  ;;  %838 = vrot.lane.b32.xlu1 %v3316_v11, %s4462_s25 }
 0x126   : > { %775 = vrot.lane.b32.xlu0 %v3319_v12, %s4462_s25  ;;  %2498 = vmatpush3.msra.mxu0 %v409_v55  ;;  %v2301_v55 = vld [vmem:[%s3223_s28 + $0x8] sm:$0xff] }
 0x127   : > { %2499 = vmatprep.subr.mxu0 %v3031_v2  ;;  %v568_v30 = vpop.permute.xlu1 %567  ;;  %v564_v57 = vpop.permute.xlu0 %563 }
 0x128   : > { %2500 = vmatpush3.msra.mxu0 %v408_v58 }
 0x129   : > { %2501 = vmatprep.subr.mxu0 %v3031_v2  ;;  %1074 = vrot.lane.b32.xlu1 %v3330_v15, %s4462_s25 }
 0x12a   : > { %1011 = vrot.lane.b32.xlu0 %v3333_v16, %s4462_s25  ;;  %2502 = vmatpush3.msra.mxu0 %v407_v27 }
 0x12b   : > { %2503 = vmatprep.subr.mxu0 %v3031_v2  ;;  %v576_v5 = vpop.permute.xlu1 %575  ;;  %v572_v28 = vpop.permute.xlu0 %571 }
 0x12c   : > { %2504 = vmatpush3.msra.mxu0 %v406_v38 }
 0x12d   : > { %834 = vrot.lane.b32.xlu1 %v3316_v11, %s3019_s11  ;;  %2543 = vmatprep.subr.mxu0 %v3031_v2 }
 0x12e   : > { %771 = vrot.lane.b32.xlu0 %v3319_v12, %s3019_s11  ;;  %2506 = vmatmul.mubr.f32.vlgmr.msra.gmra.mxu0 %v423_v42 }
 0x12f   : > { %v635_v8 = vpop.permute.xlu1 %634  ;;  %v639_v25 = vpop.permute.xlu0 %638  ;;  %2575 = vmatprep.mubr.msk.f32.mxu0 %vm4499_vm15, %v3031_v2 }
 0x130   : > { %v655_v60 = vsel %vm3418_vm1, %v576_v5, %v639_v25  ;;  %v654_v6 = vsel %vm3426_vm2, %v572_v28, %v635_v8  ;;  %v3760_v8 = vld [vmem:[%s3213_s10 + $0xc] ss:$0 sm:$0xff] }
 0x131   : > { %1070 = vrot.lane.b32.xlu1 %v3330_v15, %s3019_s11  ;;  %2509 = vmatpush3.msra.mxu1 %v655_v60 }
 0x132   : > { %1007 = vrot.lane.b32.xlu0 %v3333_v16, %s3019_s11  ;;  %2510 = vmatprep.subr.mxu1 %v3031_v2 }
 0x133   : > { %v627_v26 = vpop.permute.xlu1 %626  ;;  %v631_v63 = vpop.permute.xlu0 %630  ;;  %2511 = vmatpush3.msra.mxu1 %v654_v6  ;;  %v3773_v6 = vld [vmem:[%s3213_s10 + $0xd] ss:$0 sm:$0xff] }
 0x134   : > { %2512 = vmatprep.subr.mxu1 %v3031_v2  ;;  %v653_v1 = vsel %vm3436_vm3, %v568_v30, %v631_v63  ;;  %v652_v3 = vsel %vm3449_vm4, %v564_v57, %v627_v26 }
 0x135   : > { %830 = vrot.lane.b32.xlu1 %v3316_v11, %s4500_s29  ;;  %2513 = vmatpush3.msra.mxu1 %v653_v1 }
 0x136   : > { %767 = vrot.lane.b32.xlu0 %v3319_v12, %s4500_s29  ;;  %2514 = vmatprep.subr.mxu1 %v3031_v2 }
 0x137   : > { %v619_v21 = vpop.permute.xlu1 %618  ;;  %v623_v19 = vpop.permute.xlu0 %622  ;;  %2515 = vmatpush3.msra.mxu1 %v652_v3 }
 0x138   : > { %2516 = vmatprep.subr.mxu1 %v3031_v2  ;;  %v651_v35 = vsel %vm3463_vm5, %v560_v50, %v623_v19  ;;  %v650_v36 = vsel %vm3477_vm6, %v556_v52, %v619_v21 }
 0x139   : > { %1066 = vrot.lane.b32.xlu1 %v3330_v15, %s4500_s29  ;;  %2517 = vmatpush3.msra.mxu1 %v651_v35 }
 0x13a   : > { %1003 = vrot.lane.b32.xlu0 %v3333_v16, %s4500_s29  ;;  %2518 = vmatprep.subr.mxu1 %v3031_v2 }
 0x13b   : > { %v611_v37 = vpop.permute.xlu1 %610  ;;  %v615_v17 = vpop.permute.xlu0 %614  ;;  %2519 = vmatpush3.msra.mxu1 %v650_v36 }
 0x13c   : > { %2520 = vmatprep.subr.mxu1 %v3031_v2  ;;  %v649_v41 = vsel %vm3491_vm7, %v3556_v45, %v615_v17  ;;  %v648_v43 = vsel %vm3505_vm8, %v3558_v46, %v611_v37 }
 0x13d   : > { %826 = vrot.lane.b32.xlu1 %v3316_v11, %s3017_s7  ;;  %2521 = vmatpush3.msra.mxu1 %v649_v41 }
 0x13e   : > { %763 = vrot.lane.b32.xlu0 %v3319_v12, %s3017_s7  ;;  %2522 = vmatprep.subr.mxu1 %v3031_v2 }
 0x13f   : > { %v603_v34 = vpop.permute.xlu1 %602  ;;  %v607_v13 = vpop.permute.xlu0 %606  ;;  %2523 = vmatpush3.msra.mxu1 %v648_v43 }
 0x140   : > { %2524 = vmatprep.subr.mxu1 %v3031_v2  ;;  %v647_v45 = vsel %vm3520_vm9, %v3526_v39, %v607_v13  ;;  %v646_v46 = vsel %vm3535_vm10, %v3528_v40, %v603_v34 }
 0x141   : > { %1062 = vrot.lane.b32.xlu1 %v3330_v15, %s3017_s7  ;;  %2525 = vmatpush3.msra.mxu1 %v647_v45 }
 0x142   : > { %999 = vrot.lane.b32.xlu0 %v3333_v16, %s3017_s7  ;;  %2526 = vmatprep.subr.mxu1 %v3031_v2 }
 0x143   : > { %v595_v47 = vpop.permute.xlu1 %594  ;;  %v599_v48 = vpop.permute.xlu0 %598  ;;  %2527 = vmatpush3.msra.mxu1 %v646_v46 }
 0x144   : > { %2528 = vmatprep.subr.mxu1 %v3031_v2  ;;  %v645_v39 = vsel %vm3550_vm11, %v3497_v22, %v599_v48  ;;  %v644_v40 = vsel %vm3565_vm12, %v3499_v23, %v595_v47 }
 0x145   : > { %822 = vrot.lane.b32.xlu1 %v3316_v11, %s3015_s30  ;;  %2529 = vmatpush3.msra.mxu1 %v645_v39 }
 0x146   : > { %759 = vrot.lane.b32.xlu0 %v3319_v12, %s3015_s30  ;;  %2530 = vmatprep.subr.mxu1 %v3031_v2 }
 0x147   : > { %v587_v32 = vpop.permute.xlu1 %586  ;;  %v591_v50 = vpop.permute.xlu0 %590  ;;  %2531 = vmatpush3.msra.mxu1 %v644_v40 }
 0x148   : > { %2532 = vmatprep.subr.mxu1 %v3031_v2  ;;  %v643_v22 = vsel %vm3580_vm13, %v3469_v61, %v591_v50  ;;  %v642_v23 = vsel %vm3591_vm14, %v3471_v62, %v587_v32  ;;  %vm4501_vm13 = vnez %v4496_v10 }
 0x149   : > { %1058 = vrot.lane.b32.xlu1 %v3330_v15, %s3015_s30  ;;  %2533 = vmatpush3.msra.mxu1 %v643_v22 }
 0x14a   : > { %995 = vrot.lane.b32.xlu0 %v3333_v16, %s3015_s30  ;;  %2534 = vmatprep.subr.mxu1 %v3031_v2 }
 0x14b   : > { %v579_v52 = vpop.permute.xlu1 %578  ;;  %v583_v9 = vpop.permute.xlu0 %582  ;;  %2535 = vmatpush3.msra.mxu1 %v642_v23 }
 0x14c   : > { %2536 = vmatprep.subr.mxu1 %v3031_v2  ;;  %v641_v61 = vsel %vm4501_vm13, %v3442_v53, %v583_v9  ;;  %v640_v62 = vsel %vm3616_vm0, %v3444_v54, %v579_v52 }
 0x14d   : > { %818 = vrot.lane.b32.xlu1 %v3316_v11, %s4466_s22  ;;  %2537 = vmatpush3.msra.mxu1 %v641_v61 }
 0x14e   : > { %755 = vrot.lane.b32.xlu0 %v3319_v12, %s4466_s22  ;;  %2538 = vmatprep.subr.mxu1 %v3031_v2 }
 0x14f   : > { %v875_v30 = vpop.permute.xlu1 %874  ;;  %v812_v57 = vpop.permute.xlu0 %811  ;;  %2539 = vmatpush3.msra.mxu1 %v640_v62 }
 0x150   : > { %v891_v53 = vsel %vm3418_vm1, %v812_v57, %v875_v30  ;;  %2578 = vmatprep.subr.mxu1 %v3031_v2  ;;  %2541 = vmatmul.mubr.f32.vlgmr.msra.gmra.mxu1 %v2301_v55 }
 0x151   : > { %1054 = vrot.lane.b32.xlu1 %v3330_v15, %s4466_s22  ;;  %2544 = vmatpush3.msra.mxu0 %v891_v53 }
 0x152   : > { %991 = vrot.lane.b32.xlu0 %v3333_v16, %s4466_s22  ;;  %2545 = vmatprep.subr.mxu0 %v3031_v2 }
 0x153   : > { %v1111_v54 = vpop.permute.xlu1 %1110  ;;  %v1048_v58 = vpop.permute.xlu0 %1047  ;;  %2610 = vmatprep.mubr.msk.f32.mxu1 %vm4499_vm15, %v3031_v2 }
 0x154   : > { %v1127_v27 = vsel %vm3418_vm1, %v1048_v58, %v1111_v54 }
 0x155   : > { %814 = vrot.lane.b32.xlu1 %v3316_v11, %s3016_s5  ;;  %2579 = vmatpush3.msra.mxu1 %v1127_v27  ;;  %v3756_v11 = vld [vmem:[%s3213_s10 + $0x4] ss:$0 sm:$0xff] }
 0x156   : > { %751 = vrot.lane.b32.xlu0 %v3319_v12, %s3016_s5  ;;  %2580 = vmatprep.subr.mxu1 %v3031_v2 }
 0x157   : > { %v871_v5 = vpop.permute.xlu1 %870  ;;  %v808_v28 = vpop.permute.xlu0 %807 }
 0x158   : > { %v890_v38 = vsel %vm3426_vm2, %v808_v28, %v871_v5 }
 0x159   : > { %1050 = vrot.lane.b32.xlu1 %v3330_v15, %s3016_s5  ;;  %2546 = vmatpush3.msra.mxu0 %v890_v38  ;;  %v3769_v15 = vld [vmem:[%s3213_s10 + $0x5] ss:$0 sm:$0xff] }
 0x15a   : > { %987 = vrot.lane.b32.xlu0 %v3333_v16, %s3016_s5  ;;  %2547 = vmatprep.subr.mxu0 %v3031_v2 }
 0x15b   : > { %v1107_v12 = vpop.permute.xlu1 %1106  ;;  %v1044_v42 = vpop.permute.xlu0 %1043 }
 0x15c   : > { %v1126_v25 = vsel %vm3426_vm2, %v1044_v42, %v1107_v12 }
 0x15d   : > { %1346 = vrot.lane.b32.xlu1 %v3756_v11, %s4463_s19  ;;  %2581 = vmatpush3.msra.mxu1 %v1126_v25 }
 0x15e   : > { %1283 = vrot.lane.b32.xlu0 %v3760_v8, %s4463_s19  ;;  %2582 = vmatprep.subr.mxu1 %v3031_v2 }
 0x15f   : > { %v867_v16 = vpop.permute.xlu1 %866  ;;  %v804_v60 = vpop.permute.xlu0 %803 }
 0x160   : > { %v889_v26 = vsel %vm3436_vm3, %v804_v60, %v867_v16 }
 0x161   : > { %1582 = vrot.lane.b32.xlu1 %v3769_v15, %s4463_s19  ;;  %2548 = vmatpush3.msra.mxu0 %v889_v26 }
 0x162   : > { %1519 = vrot.lane.b32.xlu0 %v3773_v6, %s4463_s19  ;;  %2549 = vmatprep.subr.mxu0 %v3031_v2 }
 0x163   : > { %v1103_v63 = vpop.permute.xlu1 %1102  ;;  %v1040_v1 = vpop.permute.xlu0 %1039 }
 0x164   : > { %v1125_v3 = vsel %vm3436_vm3, %v1040_v1, %v1103_v63 }
 0x165   : > { %1342 = vrot.lane.b32.xlu1 %v3756_v11, %s3030_s20  ;;  %2583 = vmatpush3.msra.mxu1 %v1125_v3 }
 0x166   : > { %1279 = vrot.lane.b32.xlu0 %v3760_v8, %s3030_s20  ;;  %2584 = vmatprep.subr.mxu1 %v3031_v2 }
 0x167   : > { %v863_v21 = vpop.permute.xlu1 %862  ;;  %v800_v19 = vpop.permute.xlu0 %799 }
 0x168   : > { %v888_v35 = vsel %vm3449_vm4, %v800_v19, %v863_v21 }
 0x169   : > { %1578 = vrot.lane.b32.xlu1 %v3769_v15, %s3030_s20  ;;  %2550 = vmatpush3.msra.mxu0 %v888_v35 }
 0x16a   : > { %1515 = vrot.lane.b32.xlu0 %v3773_v6, %s3030_s20  ;;  %2551 = vmatprep.subr.mxu0 %v3031_v2 }
 0x16b   : > { %v1099_v36 = vpop.permute.xlu1 %1098  ;;  %v1036_v37 = vpop.permute.xlu0 %1035 }
 0x16c   : > { %v1124_v17 = vsel %vm3449_vm4, %v1036_v37, %v1099_v36 }
 0x16d   : > { %1338 = vrot.lane.b32.xlu1 %v3756_v11, %s4465_s8  ;;  %2585 = vmatpush3.msra.mxu1 %v1124_v17 }
 0x16e   : > { %1275 = vrot.lane.b32.xlu0 %v3760_v8, %s4465_s8  ;;  %2586 = vmatprep.subr.mxu1 %v3031_v2 }
 0x16f   : > { %v859_v41 = vpop.permute.xlu1 %858  ;;  %v796_v43 = vpop.permute.xlu0 %795 }
 0x170   : > { %v887_v34 = vsel %vm3463_vm5, %v796_v43, %v859_v41 }
 0x171   : > { %1574 = vrot.lane.b32.xlu1 %v3769_v15, %s4465_s8  ;;  %2552 = vmatpush3.msra.mxu0 %v887_v34 }
 0x172   : > { %1511 = vrot.lane.b32.xlu0 %v3773_v6, %s4465_s8  ;;  %2553 = vmatprep.subr.mxu0 %v3031_v2 }
 0x173   : > { %v1095_v13 = vpop.permute.xlu1 %1094  ;;  %v1032_v45 = vpop.permute.xlu0 %1031 }
 0x174   : > { %v1123_v46 = vsel %vm3463_vm5, %v1032_v45, %v1095_v13 }
 0x175   : > { %1334 = vrot.lane.b32.xlu1 %v3756_v11, %s3028_s26  ;;  %2587 = vmatpush3.msra.mxu1 %v1123_v46 }
 0x176   : > { %1271 = vrot.lane.b32.xlu0 %v3760_v8, %s3028_s26  ;;  %2588 = vmatprep.subr.mxu1 %v3031_v2 }
 0x177   : > { %v855_v47 = vpop.permute.xlu1 %854  ;;  %v792_v48 = vpop.permute.xlu0 %791 }
 0x178   : > { %v886_v39 = vsel %vm3477_vm6, %v792_v48, %v855_v47 }
 0x179   : > { %1570 = vrot.lane.b32.xlu1 %v3769_v15, %s3028_s26  ;;  %2554 = vmatpush3.msra.mxu0 %v886_v39 }
 0x17a   : > { %1507 = vrot.lane.b32.xlu0 %v3773_v6, %s3028_s26  ;;  %2555 = vmatprep.subr.mxu0 %v3031_v2 }
 0x17b   : > { %v1091_v40 = vpop.permute.xlu1 %1090  ;;  %v1028_v32 = vpop.permute.xlu0 %1027 }
 0x17c   : > { %v1122_v50 = vsel %vm3477_vm6, %v1028_v32, %v1091_v40 }
 0x17d   : > { %1330 = vrot.lane.b32.xlu1 %v3756_v11, %s3025_s6  ;;  %2589 = vmatpush3.msra.mxu1 %v1122_v50 }
 0x17e   : > { %1267 = vrot.lane.b32.xlu0 %v3760_v8, %s3025_s6  ;;  %2590 = vmatprep.subr.mxu1 %v3031_v2 }
 0x17f   : > { %v851_v22 = vpop.permute.xlu1 %850  ;;  %v788_v23 = vpop.permute.xlu0 %787 }
 0x180   : > { %v885_v52 = vsel %vm3491_vm7, %v788_v23, %v851_v22 }
 0x181   : > { %1566 = vrot.lane.b32.xlu1 %v3769_v15, %s3025_s6  ;;  %2556 = vmatpush3.msra.mxu0 %v885_v52 }
 0x182   : > { %1503 = vrot.lane.b32.xlu0 %v3773_v6, %s3025_s6  ;;  %2557 = vmatprep.subr.mxu0 %v3031_v2 }
 0x183   : > { %v1087_v9 = vpop.permute.xlu1 %1086 }
 0x184   : > { %v1024_v61 = vpop.permute.xlu0 %1023 }
 0x185   : > { %v1121_v55 = vsel %vm3491_vm7, %v1024_v61, %v1087_v9  ;;  %1326 = vrot.lane.b32.xlu1 %v3756_v11, %s4447_s9 }
 0x186   : > { %1263 = vrot.lane.b32.xlu0 %v3760_v8, %s4447_s9  ;;  %2591 = vmatpush3.msra.mxu1 %v1121_v55 }
 0x187   : > { %v847_v62 = vpop.permute.xlu1 %846  ;;  %2592 = vmatprep.subr.mxu1 %v3031_v2 }
 0x188   : > { %v784_v30 = vpop.permute.xlu0 %783 }
 0x189   : > { %v884_v57 = vsel %vm3505_vm8, %v784_v30, %v847_v62  ;;  %1562 = vrot.lane.b32.xlu1 %v3769_v15, %s4447_s9 }
 0x18a   : > { %1499 = vrot.lane.b32.xlu0 %v3773_v6, %s4447_s9  ;;  %2558 = vmatpush3.msra.mxu0 %v884_v57  ;;  %s4502_s9 = smov 320  }
 0x18b   : > { %v1083_v53 = vpop.permute.xlu1 %1082  ;;  %2559 = vmatprep.subr.mxu0 %v3031_v2 }
 0x18c   : > { %v1020_v54 = vpop.permute.xlu0 %1019 }
 0x18d   : > { %v1120_v58 = vsel %vm3505_vm8, %v1020_v54, %v1083_v53  ;;  %1322 = vrot.lane.b32.xlu1 %v3756_v11, %s3023_s27 }
 0x18e   : > { %1259 = vrot.lane.b32.xlu0 %v3760_v8, %s3023_s27  ;;  %2593 = vmatpush3.msra.mxu1 %v1120_v58 }
 0x18f   : > { %v843_v27 = vpop.permute.xlu1 %842  ;;  %2594 = vmatprep.subr.mxu1 %v3031_v2 }
 0x190   : > { %v780_v5 = vpop.permute.xlu0 %779 }
 0x191   : > { %v883_v28 = vsel %vm3520_vm9, %v780_v5, %v843_v27  ;;  %1558 = vrot.lane.b32.xlu1 %v3769_v15, %s3023_s27  ;;  %v3958_v5 = vld [vmem:[%s3223_s28 + $0x10] sm:$0xff] }
 0x192   : > { %1495 = vrot.lane.b32.xlu0 %v3773_v6, %s3023_s27  ;;  %2560 = vmatpush3.msra.mxu0 %v883_v28 }
 0x193   : > { %v1079_v38 = vpop.permute.xlu1 %1078  ;;  %2561 = vmatprep.subr.mxu0 %v3031_v2 }
 0x194   : > { %v1016_v12 = vpop.permute.xlu0 %1015 }
 0x195   : > { %v1119_v42 = vsel %vm3520_vm9, %v1016_v12, %v1079_v38  ;;  %1318 = vrot.lane.b32.xlu1 %v3756_v11, %s4502_s9 }
 0x196   : > { %1255 = vrot.lane.b32.xlu0 %v3760_v8, %s4502_s9  ;;  %2595 = vmatpush3.msra.mxu1 %v1119_v42  ;;  %v3969_v42 = vld [vmem:[%s3223_s28 + $0x18] sm:$0xff] }
 0x197   : > { %v839_v25 = vpop.permute.xlu1 %838  ;;  %2596 = vmatprep.subr.mxu1 %v3031_v2 }
 0x198   : > { %v776_v16 = vpop.permute.xlu0 %775 }
 0x199   : > { %v882_v60 = vsel %vm3535_vm10, %v776_v16, %v839_v25  ;;  %1554 = vrot.lane.b32.xlu1 %v3769_v15, %s4502_s9 }
 0x19a   : > { %1491 = vrot.lane.b32.xlu0 %v3773_v6, %s4502_s9  ;;  %2562 = vmatpush3.msra.mxu0 %v882_v60 }
 0x19b   : > { %v1075_v26 = vpop.permute.xlu1 %1074  ;;  %2563 = vmatprep.subr.mxu0 %v3031_v2 }
 0x19c   : > { %v1012_v63 = vpop.permute.xlu0 %1011 }
 0x19d   : > { %v1118_v1 = vsel %vm3535_vm10, %v1012_v63, %v1075_v26  ;;  %1314 = vrot.lane.b32.xlu1 %v3756_v11, %s4464_s17 }
 0x19e   : > { %1251 = vrot.lane.b32.xlu0 %v3760_v8, %s4464_s17  ;;  %2597 = vmatpush3.msra.mxu1 %v1118_v1 }
 0x19f   : > { %v835_v3 = vpop.permute.xlu1 %834  ;;  %2598 = vmatprep.subr.mxu1 %v3031_v2 }
 0x1a0   : > { %v772_v21 = vpop.permute.xlu0 %771 }
 0x1a1   : > { %v881_v19 = vsel %vm3550_vm11, %v772_v21, %v835_v3  ;;  %1550 = vrot.lane.b32.xlu1 %v3769_v15, %s4464_s17 }
 0x1a2   : > { %1487 = vrot.lane.b32.xlu0 %v3773_v6, %s4464_s17  ;;  %2564 = vmatpush3.msra.mxu0 %v881_v19 }
 0x1a3   : > { %v1071_v35 = vpop.permute.xlu1 %1070  ;;  %2565 = vmatprep.subr.mxu0 %v3031_v2 }
 0x1a4   : > { %v1008_v36 = vpop.permute.xlu0 %1007 }
 0x1a5   : > { %v1117_v37 = vsel %vm3550_vm11, %v1008_v36, %v1071_v35  ;;  %1310 = vrot.lane.b32.xlu1 %v3756_v11, %s4462_s25  ;;  %vm4503_vm11 = vnez %v4492_v14  ;;  %v4007_v36 = vld [vmem:[%s3213_s10 + $0xe] ss:$0 sm:$0xff] }
 0x1a6   : > { %1247 = vrot.lane.b32.xlu0 %v3760_v8, %s4462_s25  ;;  %2599 = vmatpush3.msra.mxu1 %v1117_v37 }
 0x1a7   : > { %v831_v17 = vpop.permute.xlu1 %830  ;;  %2600 = vmatprep.subr.mxu1 %v3031_v2 }
 0x1a8   : > { %v768_v41 = vpop.permute.xlu0 %767 }
 0x1a9   : > { %v880_v43 = vsel %vm3565_vm12, %v768_v41, %v831_v17  ;;  %1546 = vrot.lane.b32.xlu1 %v3769_v15, %s4462_s25  ;;  %v4020_v41 = vld [vmem:[%s3213_s10 + $0xf] ss:$0 sm:$0xff] }
 0x1aa   : > { %1483 = vrot.lane.b32.xlu0 %v3773_v6, %s4462_s25  ;;  %2566 = vmatpush3.msra.mxu0 %v880_v43 }
 0x1ab   : > { %v1067_v34 = vpop.permute.xlu1 %1066  ;;  %2567 = vmatprep.subr.mxu0 %v3031_v2 }
 0x1ac   : > { %v1004_v13 = vpop.permute.xlu0 %1003 }
 0x1ad   : > { %v1116_v45 = vsel %vm3565_vm12, %v1004_v13, %v1067_v34  ;;  %1306 = vrot.lane.b32.xlu1 %v3756_v11, %s3019_s11 }
 0x1ae   : > { %1243 = vrot.lane.b32.xlu0 %v3760_v8, %s3019_s11  ;;  %2601 = vmatpush3.msra.mxu1 %v1116_v45 }
 0x1af   : > { %v827_v46 = vpop.permute.xlu1 %826  ;;  %2602 = vmatprep.subr.mxu1 %v3031_v2 }
 0x1b0   : > { %v764_v47 = vpop.permute.xlu0 %763 }
 0x1b1   : > { %v879_v48 = vsel %vm4503_vm11, %v764_v47, %v827_v46  ;;  %1542 = vrot.lane.b32.xlu1 %v3769_v15, %s3019_s11 }
 0x1b2   : > { %1479 = vrot.lane.b32.xlu0 %v3773_v6, %s3019_s11  ;;  %2568 = vmatpush3.msra.mxu0 %v879_v48 }
 0x1b3   : > { %v1063_v39 = vpop.permute.xlu1 %1062  ;;  %2569 = vmatprep.subr.mxu0 %v3031_v2 }
 0x1b4   : > { %v1000_v40 = vpop.permute.xlu0 %999 }
 0x1b5   : > { %v1115_v32 = vsel %vm4503_vm11, %v1000_v40, %v1063_v39  ;;  %1302 = vrot.lane.b32.xlu1 %v3756_v11, %s4500_s29 }
 0x1b6   : > { %1239 = vrot.lane.b32.xlu0 %v3760_v8, %s4500_s29  ;;  %2603 = vmatpush3.msra.mxu1 %v1115_v32 }
 0x1b7   : > { %v823_v50 = vpop.permute.xlu1 %822  ;;  %2604 = vmatprep.subr.mxu1 %v3031_v2 }
 0x1b8   : > { %v760_v22 = vpop.permute.xlu0 %759 }
 0x1b9   : > { %v878_v23 = vsel %vm3591_vm14, %v760_v22, %v823_v50  ;;  %1538 = vrot.lane.b32.xlu1 %v3769_v15, %s4500_s29 }
 0x1ba   : > { %1475 = vrot.lane.b32.xlu0 %v3773_v6, %s4500_s29  ;;  %2570 = vmatpush3.msra.mxu0 %v878_v23 }
 0x1bb   : > { %v1059_v52 = vpop.permute.xlu1 %1058  ;;  %2571 = vmatprep.subr.mxu0 %v3031_v2 }
 0x1bc   : > { %v996_v9 = vpop.permute.xlu0 %995 }
 0x1bd   : > { %v1114_v61 = vsel %vm3591_vm14, %v996_v9, %v1059_v52  ;;  %1298 = vrot.lane.b32.xlu1 %v3756_v11, %s3017_s7 }
 0x1be   : > { %1235 = vrot.lane.b32.xlu0 %v3760_v8, %s3017_s7  ;;  %2605 = vmatpush3.msra.mxu1 %v1114_v61 }
 0x1bf   : > { %v819_v55 = vpop.permute.xlu1 %818  ;;  %2606 = vmatprep.subr.mxu1 %v3031_v2 }
 0x1c0   : > { %v756_v62 = vpop.permute.xlu0 %755 }
 0x1c1   : > { %v877_v30 = vsel %vm4501_vm13, %v756_v62, %v819_v55  ;;  %1534 = vrot.lane.b32.xlu1 %v3769_v15, %s3017_s7 }
 0x1c2   : > { %1471 = vrot.lane.b32.xlu0 %v3773_v6, %s3017_s7  ;;  %2572 = vmatpush3.msra.mxu0 %v877_v30 }
 0x1c3   : > { %v1055_v57 = vpop.permute.xlu1 %1054  ;;  %2573 = vmatprep.subr.mxu0 %v3031_v2 }
 0x1c4   : > { %v992_v53 = vpop.permute.xlu0 %991 }
 0x1c5   : > { %v1113_v54 = vsel %vm4501_vm13, %v992_v53, %v1055_v57  ;;  %1294 = vrot.lane.b32.xlu1 %v3756_v11, %s3015_s30 }
 0x1c6   : > { %1231 = vrot.lane.b32.xlu0 %v3760_v8, %s3015_s30  ;;  %2607 = vmatpush3.msra.mxu1 %v1113_v54 }
 0x1c7   : > { %v815_v58 = vpop.permute.xlu1 %814  ;;  %2608 = vmatprep.subr.mxu1 %v3031_v2 }
 0x1c8   : > { %v752_v27 = vpop.permute.xlu0 %751 }
 0x1c9   : > { %v876_v28 = vsel %vm3616_vm0, %v752_v27, %v815_v58  ;;  %1530 = vrot.lane.b32.xlu1 %v3769_v15, %s3015_s30 }
 0x1ca   : > { %1467 = vrot.lane.b32.xlu0 %v3773_v6, %s3015_s30  ;;  %2574 = vmatpush3.msra.mxu0 %v876_v28 }
 0x1cb   : > { %v1051_v38 = vpop.permute.xlu1 %1050  ;;  %2613 = vmatprep.subr.mxu0 %v3031_v2  ;;  %2576 = vmatmul.mubr.f32.vlgmr.msra.gmra.mxu0 %v3958_v5 }
 0x1cc   : > { %v988_v12 = vpop.permute.xlu0 %987  ;;  %2645 = vmatprep.mubr.msk.f32.mxu0 %vm4499_vm15, %v3031_v2 }
 0x1cd   : > { %v1112_v25 = vsel %vm3616_vm0, %v988_v12, %v1051_v38  ;;  %1290 = vrot.lane.b32.xlu1 %v3756_v11, %s4466_s22 }
 0x1ce   : > { %1227 = vrot.lane.b32.xlu0 %v3760_v8, %s4466_s22  ;;  %2609 = vmatpush3.msra.mxu1 %v1112_v25 }
 0x1cf   : > { %v1347_v16 = vpop.permute.xlu1 %1346  ;;  %2648 = vmatprep.subr.mxu1 %v3031_v2  ;;  %2611 = vmatmul.mubr.f32.vlgmr.msra.gmra.mxu1 %v3969_v42 }
 0x1d0   : > { %v1284_v60 = vpop.permute.xlu0 %1283  ;;  %2680 = vmatprep.mubr.msk.f32.mxu1 %vm4499_vm15, %v3031_v2 }
 0x1d1   : > { %v1363_v26 = vsel %vm3418_vm1, %v1284_v60, %v1347_v16  ;;  %1526 = vrot.lane.b32.xlu1 %v3769_v15, %s4466_s22 }
 0x1d2   : > { %1463 = vrot.lane.b32.xlu0 %v3773_v6, %s4466_s22  ;;  %2614 = vmatpush3.msra.mxu0 %v1363_v26 }
 0x1d3   : > { %v1583_v63 = vpop.permute.xlu1 %1582  ;;  %2615 = vmatprep.subr.mxu0 %v3031_v2 }
 0x1d4   : > { %v1520_v1 = vpop.permute.xlu0 %1519 }
 0x1d5   : > { %v1599_v3 = vsel %vm3418_vm1, %v1520_v1, %v1583_v63  ;;  %1286 = vrot.lane.b32.xlu1 %v3756_v11, %s3016_s5  ;;  %v4004_v11 = vld [vmem:[%s3213_s10 + $0x6] ss:$0 sm:$0xff] }
 0x1d6   : > { %1223 = vrot.lane.b32.xlu0 %v3760_v8, %s3016_s5  ;;  %2649 = vmatpush3.msra.mxu1 %v1599_v3 }
 0x1d7   : > { %v1343_v21 = vpop.permute.xlu1 %1342  ;;  %2650 = vmatprep.subr.mxu1 %v3031_v2 }
 0x1d8   : > { %v1280_v19 = vpop.permute.xlu0 %1279 }
 0x1d9   : > { %v1362_v35 = vsel %vm3426_vm2, %v1280_v19, %v1343_v21  ;;  %1522 = vrot.lane.b32.xlu1 %v3769_v15, %s3016_s5  ;;  %v4017_v15 = vld [vmem:[%s3213_s10 + $0x7] ss:$0 sm:$0xff]  ;;  %s4504_s10 = smov 336  }
 0x1da   : > { %1459 = vrot.lane.b32.xlu0 %v3773_v6, %s3016_s5  ;;  %2616 = vmatpush3.msra.mxu0 %v1362_v35 }
 0x1db   : > { %v1579_v8 = vpop.permute.xlu1 %1578  ;;  %2617 = vmatprep.subr.mxu0 %v3031_v2 }
 0x1dc   : > { %v1516_v37 = vpop.permute.xlu0 %1515 }
 0x1dd   : > { %v1598_v17 = vsel %vm3426_vm2, %v1516_v37, %v1579_v8  ;;  %1818 = vrot.lane.b32.xlu1 %v4004_v11, %s4463_s19 }
 0x1de   : > { %1755 = vrot.lane.b32.xlu0 %v4007_v36, %s4463_s19  ;;  %2651 = vmatpush3.msra.mxu1 %v1598_v17 }
 0x1df   : > { %v1339_v6 = vpop.permute.xlu1 %1338  ;;  %2652 = vmatprep.subr.mxu1 %v3031_v2 }
 0x1e0   : > { %v1276_v43 = vpop.permute.xlu0 %1275 }
 0x1e1   : > { %v1361_v34 = vsel %vm3436_vm3, %v1276_v43, %v1339_v6  ;;  %2054 = vrot.lane.b32.xlu1 %v4017_v15, %s4463_s19 }
 0x1e2   : > { %1991 = vrot.lane.b32.xlu0 %v4020_v41, %s4463_s19  ;;  %2618 = vmatpush3.msra.mxu0 %v1361_v34 }
 0x1e3   : > { %v1575_v13 = vpop.permute.xlu1 %1574  ;;  %2619 = vmatprep.subr.mxu0 %v3031_v2 }
 0x1e4   : > { %v1512_v45 = vpop.permute.xlu0 %1511 }
 0x1e5   : > { %v1597_v46 = vsel %vm3436_vm3, %v1512_v45, %v1575_v13  ;;  %1814 = vrot.lane.b32.xlu1 %v4004_v11, %s3030_s20 }
 0x1e6   : > { %1751 = vrot.lane.b32.xlu0 %v4007_v36, %s3030_s20  ;;  %2653 = vmatpush3.msra.mxu1 %v1597_v46 }
 0x1e7   : > { %v1335_v47 = vpop.permute.xlu1 %1334  ;;  %2654 = vmatprep.subr.mxu1 %v3031_v2 }
 0x1e8   : > { %v1272_v48 = vpop.permute.xlu0 %1271 }
 0x1e9   : > { %v1360_v39 = vsel %vm3449_vm4, %v1272_v48, %v1335_v47  ;;  %2050 = vrot.lane.b32.xlu1 %v4017_v15, %s3030_s20 }
 0x1ea   : > { %1987 = vrot.lane.b32.xlu0 %v4020_v41, %s3030_s20  ;;  %2620 = vmatpush3.msra.mxu0 %v1360_v39 }
 0x1eb   : > { %v1571_v40 = vpop.permute.xlu1 %1570  ;;  %2621 = vmatprep.subr.mxu0 %v3031_v2 }
 0x1ec   : > { %v1508_v32 = vpop.permute.xlu0 %1507 }
 0x1ed   : > { %v1596_v50 = vsel %vm3449_vm4, %v1508_v32, %v1571_v40  ;;  %1810 = vrot.lane.b32.xlu1 %v4004_v11, %s4465_s8 }
 0x1ee   : > { %1747 = vrot.lane.b32.xlu0 %v4007_v36, %s4465_s8  ;;  %2655 = vmatpush3.msra.mxu1 %v1596_v50 }
 0x1ef   : > { %v1331_v22 = vpop.permute.xlu1 %1330  ;;  %2656 = vmatprep.subr.mxu1 %v3031_v2 }
 0x1f0   : > { %v1268_v23 = vpop.permute.xlu0 %1267 }
 0x1f1   : > { %v1359_v52 = vsel %vm3463_vm5, %v1268_v23, %v1331_v22  ;;  %2046 = vrot.lane.b32.xlu1 %v4017_v15, %s4465_s8 }
 0x1f2   : > { %1983 = vrot.lane.b32.xlu0 %v4020_v41, %s4465_s8  ;;  %2622 = vmatpush3.msra.mxu0 %v1359_v52 }
 0x1f3   : > { %v1567_v9 = vpop.permute.xlu1 %1566  ;;  %2623 = vmatprep.subr.mxu0 %v3031_v2 }
 0x1f4   : > { %v1504_v61 = vpop.permute.xlu0 %1503 }
 0x1f5   : > { %v1595_v55 = vsel %vm3463_vm5, %v1504_v61, %v1567_v9  ;;  %1806 = vrot.lane.b32.xlu1 %v4004_v11, %s3028_s26 }
 0x1f6   : > { %1743 = vrot.lane.b32.xlu0 %v4007_v36, %s3028_s26  ;;  %2657 = vmatpush3.msra.mxu1 %v1595_v55 }
 0x1f7   : > { %v1327_v62 = vpop.permute.xlu1 %1326  ;;  %2658 = vmatprep.subr.mxu1 %v3031_v2 }
 0x1f8   : > { %v1264_v30 = vpop.permute.xlu0 %1263 }
 0x1f9   : > { %v1358_v57 = vsel %vm3477_vm6, %v1264_v30, %v1327_v62  ;;  %2042 = vrot.lane.b32.xlu1 %v4017_v15, %s3028_s26 }
 0x1fa   : > { %1979 = vrot.lane.b32.xlu0 %v4020_v41, %s3028_s26  ;;  %2624 = vmatpush3.msra.mxu0 %v1358_v57 }
 0x1fb   : > { %v1563_v53 = vpop.permute.xlu1 %1562  ;;  %2625 = vmatprep.subr.mxu0 %v3031_v2 }
 0x1fc   : > { %v1500_v54 = vpop.permute.xlu0 %1499 }
 0x1fd   : > { %v1594_v58 = vsel %vm3477_vm6, %v1500_v54, %v1563_v53  ;;  %1802 = vrot.lane.b32.xlu1 %v4004_v11, %s3025_s6 }
 0x1fe   : > { %1739 = vrot.lane.b32.xlu0 %v4007_v36, %s3025_s6  ;;  %2659 = vmatpush3.msra.mxu1 %v1594_v58 }
 0x1ff   : > { %v1323_v27 = vpop.permute.xlu1 %1322  ;;  %2660 = vmatprep.subr.mxu1 %v3031_v2 }
 0x200   : > { %v1260_v28 = vpop.permute.xlu0 %1259 }
 0x201   : > { %v1357_v38 = vsel %vm3491_vm7, %v1260_v28, %v1323_v27  ;;  %2038 = vrot.lane.b32.xlu1 %v4017_v15, %s3025_s6 }
 0x202   : > { %1975 = vrot.lane.b32.xlu0 %v4020_v41, %s3025_s6  ;;  %2626 = vmatpush3.msra.mxu0 %v1357_v38 }
 0x203   : > { %v1559_v12 = vpop.permute.xlu1 %1558  ;;  %2627 = vmatprep.subr.mxu0 %v3031_v2 }
 0x204   : > { %v1496_v25 = vpop.permute.xlu0 %1495 }
 0x205   : > { %v1593_v16 = vsel %vm3491_vm7, %v1496_v25, %v1559_v12  ;;  %1798 = vrot.lane.b32.xlu1 %v4004_v11, %s4504_s10 }
 0x206   : > { %1735 = vrot.lane.b32.xlu0 %v4007_v36, %s4504_s10  ;;  %2661 = vmatpush3.msra.mxu1 %v1593_v16 }
 0x207   : > { %v1319_v60 = vpop.permute.xlu1 %1318  ;;  %2662 = vmatprep.subr.mxu1 %v3031_v2 }
 0x208   : > { %v1256_v26 = vpop.permute.xlu0 %1255 }
 0x209   : > { %v1356_v63 = vsel %vm3505_vm8, %v1256_v26, %v1319_v60  ;;  %2034 = vrot.lane.b32.xlu1 %v4017_v15, %s4504_s10 }
 0x20a   : > { %1971 = vrot.lane.b32.xlu0 %v4020_v41, %s4504_s10  ;;  %2628 = vmatpush3.msra.mxu0 %v1356_v63 }
 0x20b   : > { %v1555_v1 = vpop.permute.xlu1 %1554  ;;  %2629 = vmatprep.subr.mxu0 %v3031_v2 }
 0x20c   : > { %v1492_v3 = vpop.permute.xlu0 %1491 }
 0x20d   : > { %v1592_v21 = vsel %vm3505_vm8, %v1492_v3, %v1555_v1  ;;  %1794 = vrot.lane.b32.xlu1 %v4004_v11, %s3023_s27 }
 0x20e   : > { %1731 = vrot.lane.b32.xlu0 %v4007_v36, %s3023_s27  ;;  %2663 = vmatpush3.msra.mxu1 %v1592_v21 }
 0x20f   : > { %v1315_v19 = vpop.permute.xlu1 %1314  ;;  %2664 = vmatprep.subr.mxu1 %v3031_v2 }
 0x210   : > { %v1252_v35 = vpop.permute.xlu0 %1251 }
 0x211   : > { %v1355_v8 = vsel %vm3520_vm9, %v1252_v35, %v1315_v19  ;;  %2030 = vrot.lane.b32.xlu1 %v4017_v15, %s3023_s27 }
 0x212   : > { %1967 = vrot.lane.b32.xlu0 %v4020_v41, %s3023_s27  ;;  %2630 = vmatpush3.msra.mxu0 %v1355_v8 }
 0x213   : > { %v1551_v37 = vpop.permute.xlu1 %1550  ;;  %2631 = vmatprep.subr.mxu0 %v3031_v2 }
 0x214   : > { %v1488_v17 = vpop.permute.xlu0 %1487 }
 0x215   : > { %v1591_v6 = vsel %vm3520_vm9, %v1488_v17, %v1551_v37  ;;  %1790 = vrot.lane.b32.xlu1 %v4004_v11, %s4502_s9  ;;  %vm4505_vm9 = vnez %v4488_v18  ;;  %v4206_v37 = vld [vmem:[%s3223_s28 + $0x20] sm:$0xff] }
 0x216   : > { %1727 = vrot.lane.b32.xlu0 %v4007_v36, %s4502_s9  ;;  %2665 = vmatpush3.msra.mxu1 %v1591_v6 }
 0x217   : > { %v1311_v43 = vpop.permute.xlu1 %1310  ;;  %2666 = vmatprep.subr.mxu1 %v3031_v2 }
 0x218   : > { %v1248_v34 = vpop.permute.xlu0 %1247 }
 0x219   : > { %v1354_v13 = vsel %vm3535_vm10, %v1248_v34, %v1311_v43  ;;  %2026 = vrot.lane.b32.xlu1 %v4017_v15, %s4502_s9  ;;  %v4217_v34 = vld [vmem:[%s3223_s28 + $0x28] sm:$0xff] }
 0x21a   : > { %1963 = vrot.lane.b32.xlu0 %v4020_v41, %s4502_s9  ;;  %2632 = vmatpush3.msra.mxu0 %v1354_v13 }
 0x21b   : > { %v1547_v45 = vpop.permute.xlu1 %1546  ;;  %2633 = vmatprep.subr.mxu0 %v3031_v2 }
 0x21c   : > { %v1484_v46 = vpop.permute.xlu0 %1483 }
 0x21d   : > { %v1590_v47 = vsel %vm3535_vm10, %v1484_v46, %v1547_v45  ;;  %1786 = vrot.lane.b32.xlu1 %v4004_v11, %s4464_s17  ;;  %v490_v46 = vpop.f32.mrf.mxu0 }
 0x21e   : > { %1723 = vrot.lane.b32.xlu0 %v4007_v36, %s4464_s17  ;;  %2667 = vmatpush3.msra.mxu1 %v1590_v47 }
 0x21f   : > { %v1307_v48 = vpop.permute.xlu1 %1306  ;;  %2668 = vmatprep.subr.mxu1 %v3031_v2 }
 0x220   : > { %v1244_v39 = vpop.permute.xlu0 %1243 }
 0x221   : > { %v1353_v40 = vsel %vm4505_vm9, %v1244_v39, %v1307_v48  ;;  %2022 = vrot.lane.b32.xlu1 %v4017_v15, %s4464_s17  ;;  %v725_v48 = vpop.f32.mrf.mxu1 }
 0x222   : > { %1959 = vrot.lane.b32.xlu0 %v4020_v41, %s4464_s17  ;;  %2634 = vmatpush3.msra.mxu0 %v1353_v40  ;;  %v2507_v40 = vpop.f32.mrf.mxu0 }
 0x223   : > { %v1543_v32 = vpop.permute.xlu1 %1542  ;;  %2635 = vmatprep.subr.mxu0 %v3031_v2 }
 0x224   : > { %v1480_v50 = vpop.permute.xlu0 %1479 }
 0x225   : > { %v1589_v22 = vsel %vm4505_vm9, %v1480_v50, %v1543_v32  ;;  %1782 = vrot.lane.b32.xlu1 %v4004_v11, %s4462_s25  ;;  %v2542_v32 = vpop.f32.mrf.mxu1 }
 0x226   : > { %1719 = vrot.lane.b32.xlu0 %v4007_v36, %s4462_s25  ;;  %2669 = vmatpush3.msra.mxu1 %v1589_v22 }
 0x227   : > { %v1303_v23 = vpop.permute.xlu1 %1302  ;;  %2670 = vmatprep.subr.mxu1 %v3031_v2 }
 0x228   : > { %v1240_v52 = vpop.permute.xlu0 %1239 }
 0x229   : > { %v1352_v9 = vsel %vm3565_vm12, %v1240_v52, %v1303_v23  ;;  %2018 = vrot.lane.b32.xlu1 %v4017_v15, %s4462_s25  ;;  %v498_v23 = vld [vmem:[%s3223_s28] sm:$0xff] }
 0x22a   : > { %1955 = vrot.lane.b32.xlu0 %v4020_v41, %s4462_s25  ;;  %2636 = vmatpush3.msra.mxu0 %v1352_v9  ;;  %s4230_s25 = sshll.u32 %s3077_s16, 3  ;;  %v2302_v9 = vld [vmem:[%s3223_s28 + $0x8] sm:$0xff] }
 0x22b   : > { %v1539_v61 = vpop.permute.xlu1 %1538  ;;  %2637 = vmatprep.subr.mxu0 %v3031_v2  ;;  %s982_s20 = sadd.s32 3, %s4230_s25  ;;  %s1454_s9 = sadd.s32 5, %s4230_s25 }
 0x22c   : > { %v1476_v55 = vpop.permute.xlu0 %1475  ;;  %s1203_s27 = sld [smem:[#allocation3 + %s982_s20]]  ;;  %s1926_s10 = sadd.s32 7, %s4230_s25 }
 0x22d   : > { %v1588_v62 = vsel %vm3565_vm12, %v1476_v55, %v1539_v61  ;;  %1778 = vrot.lane.b32.xlu1 %v4004_v11, %s3019_s11  ;;  %s1675_s17 = sld [smem:[#allocation3 + %s1454_s9]] }
 0x22e   : > { %1715 = vrot.lane.b32.xlu0 %v4007_v36, %s3019_s11  ;;  %2671 = vmatpush3.msra.mxu1 %v1588_v62 }
 0x22f   : > { %v1299_v30 = vpop.permute.xlu1 %1298  ;;  %2672 = vmatprep.subr.mxu1 %v3031_v2 }
 0x230   : > { %v1236_v57 = vpop.permute.xlu0 %1235 }
 0x231   : > { %v1351_v53 = vsel %vm4503_vm11, %v1236_v57, %v1299_v30  ;;  %2014 = vrot.lane.b32.xlu1 %v4017_v15, %s3019_s11 }
 0x232   : > { %1951 = vrot.lane.b32.xlu0 %v4020_v41, %s3019_s11  ;;  %2638 = vmatpush3.msra.mxu0 %v1351_v53  ;;  %s4506_s11 = sshll.u32 %s3209_s4, 6 }
 0x233   : > { %v1535_v54 = vpop.permute.xlu1 %1534  ;;  %2639 = vmatprep.subr.mxu0 %v3031_v2 }
 0x234   : > { %v1472_v58 = vpop.permute.xlu0 %1471 }
 0x235   : > { %v1587_v27 = vsel %vm4503_vm11, %v1472_v58, %v1535_v54  ;;  %1774 = vrot.lane.b32.xlu1 %v4004_v11, %s4500_s29 }
 0x236   : > { %1711 = vrot.lane.b32.xlu0 %v4007_v36, %s4500_s29  ;;  %2673 = vmatpush3.msra.mxu1 %v1587_v27 }
 0x237   : > { %v1295_v28 = vpop.permute.xlu1 %1294  ;;  %2674 = vmatprep.subr.mxu1 %v3031_v2 }
 0x238   : > { %v1232_v38 = vpop.permute.xlu0 %1231 }
 0x239   : > { %v1350_v12 = vsel %vm3591_vm14, %v1232_v38, %v1295_v28  ;;  %2010 = vrot.lane.b32.xlu1 %v4017_v15, %s4500_s29 }
 0x23a   : > { %1947 = vrot.lane.b32.xlu0 %v4020_v41, %s4500_s29  ;;  %2640 = vmatpush3.msra.mxu0 %v1350_v12  ;;  %s1218_s29 = sadd.s32 4, %s4230_s25 }
 0x23b   : > { %v1531_v25 = vpop.permute.xlu1 %1530  ;;  %2641 = vmatprep.subr.mxu0 %v3031_v2  ;;  %s1439_s6 = sld [smem:[#allocation3 + %s1218_s29]] }
 0x23c   : > { %v1468_v16 = vpop.permute.xlu0 %1467 }
 0x23d   : > { %v1586_v60 = vsel %vm3591_vm14, %v1468_v16, %v1531_v25  ;;  %1770 = vrot.lane.b32.xlu1 %v4004_v11, %s3017_s7 }
 0x23e   : > { %1707 = vrot.lane.b32.xlu0 %v4007_v36, %s3017_s7  ;;  %2675 = vmatpush3.msra.mxu1 %v1586_v60 }
 0x23f   : > { %v1291_v26 = vpop.permute.xlu1 %1290  ;;  %2676 = vmatprep.subr.mxu1 %v3031_v2 }
 0x240   : > { %v1228_v63 = vpop.permute.xlu0 %1227 }
 0x241   : > { %v1349_v1 = vsel %vm4501_vm13, %v1228_v63, %v1291_v26  ;;  %2006 = vrot.lane.b32.xlu1 %v4017_v15, %s3017_s7 }
 0x242   : > { %1943 = vrot.lane.b32.xlu0 %v4020_v41, %s3017_s7  ;;  %2642 = vmatpush3.msra.mxu0 %v1349_v1  ;;  %s510_s7 = sadd.s32 1, %s4230_s25 }
 0x243   : > { %v1527_v3 = vpop.permute.xlu1 %1526  ;;  %2643 = vmatprep.subr.mxu0 %v3031_v2  ;;  %s731_s8 = sld [smem:[#allocation3 + %s510_s7]] }
 0x244   : > { %v1464_v21 = vpop.permute.xlu0 %1463 }
 0x245   : > { %v1585_v19 = vsel %vm4501_vm13, %v1464_v21, %v1527_v3  ;;  %1766 = vrot.lane.b32.xlu1 %v4004_v11, %s3015_s30 }
 0x246   : > { %1703 = vrot.lane.b32.xlu0 %v4007_v36, %s3015_s30  ;;  %2677 = vmatpush3.msra.mxu1 %v1585_v19 }
 0x247   : > { %v1287_v35 = vpop.permute.xlu1 %1286  ;;  %2678 = vmatprep.subr.mxu1 %v3031_v2 }
 0x248   : > { %v1224_v8 = vpop.permute.xlu0 %1223 }
 0x249   : > { %v1348_v17 = vsel %vm3616_vm0, %v1224_v8, %v1287_v35  ;;  %2002 = vrot.lane.b32.xlu1 %v4017_v15, %s3015_s30  ;;  %v734_v30 = vstv %s731_s8 }
 0x24a   : > { %1939 = vrot.lane.b32.xlu0 %v4020_v41, %s3015_s30  ;;  %2644 = vmatpush3.msra.mxu0 %v1348_v17  ;;  %s496_s30 = sld [smem:[#allocation3 + %s4230_s25]]  ;;  %v735_v53 = vmul.f32 %v2302_v9, %v734_v30 }
 0x24b   : > { %v1523_v6 = vpop.permute.xlu1 %1522  ;;  %2683 = vmatprep.subr.mxu0 %v3031_v2  ;;  %2646 = vmatmul.mubr.f32.vlgmr.msra.gmra.mxu0 %v4206_v37 }
 0x24c   : > { %v1460_v43 = vpop.permute.xlu0 %1459  ;;  %2715 = vmatprep.mubr.msk.f32.mxu0 %vm4499_vm15, %v3031_v2 }
 0x24d   : > { %v1584_v13 = vsel %vm3616_vm0, %v1460_v43, %v1523_v6  ;;  %1762 = vrot.lane.b32.xlu1 %v4004_v11, %s4466_s22 }
 0x24e   : > { %1699 = vrot.lane.b32.xlu0 %v4007_v36, %s4466_s22  ;;  %2679 = vmatpush3.msra.mxu1 %v1584_v13 }
 0x24f   : > { %v1819_v45 = vpop.permute.xlu1 %1818  ;;  %2718 = vmatprep.subr.mxu1 %v3031_v2  ;;  %2681 = vmatmul.mubr.f32.vlgmr.msra.gmra.mxu1 %v4217_v34 }
 0x250   : > { %v1756_v47 = vpop.permute.xlu0 %1755  ;;  %2750 = vmatprep.mubr.msk.f32.mxu1 %vm4499_vm15, %v3031_v2  ;;  %v499_v61 = vstv %s496_s30  ;;  %s2147_s30 = sld [smem:[#allocation3 + %s1926_s10]] }
 0x251   : > { %v1835_v39 = vsel %vm3418_vm1, %v1756_v47, %v1819_v45  ;;  %1998 = vrot.lane.b32.xlu1 %v4017_v15, %s4466_s22  ;;  %v500_v62 = vmul.f32 %v499_v61, %v498_v23 }
 0x252   : > { %1935 = vrot.lane.b32.xlu0 %v4020_v41, %s4466_s22  ;;  %2684 = vmatpush3.msra.mxu0 %v1835_v39  ;;  %s4288_s22 = scalar_lea.vmem [#allocation10], %s4506_s11 }
 0x253   : > { %v2055_v50 = vpop.permute.xlu1 %2054  ;;  %2685 = vmatprep.subr.mxu0 %v3031_v2  ;;  %s2176_s7 = sshll.u32 %s4288_s22, 4  ;;  %s4374_s7 = int_to_ptr.vmem [resolvable:$true] %s2176_s7 }
 0x254   : > { %v1992_v22 = vpop.permute.xlu0 %1991  ;;  %s2936_s20 = scalar_lea.vmem %s4374_s7, 1024 }
 0x255   : > { %v2071_v52 = vsel %vm3418_vm1, %v1992_v22, %v2055_v50  ;;  %1758 = vrot.lane.b32.xlu1 %v4004_v11, %s3016_s5  ;;  %v501_v11 = vadd.f32 %v500_v62, %v490_v46  ;;  %vm4507_vm1 = vnez %v4484_v20  ;;  %p2937_p11 = scmp.ne.s32.totalorder %s4374_s7, %s2936_s20 }
 0x256   : > { %1695 = vrot.lane.b32.xlu0 %v4007_v36, %s3016_s5  ;;  %2719 = vmatpush3.msra.mxu1 %v2071_v52  ;;  %v736_v36 = vadd.f32 %v735_v53, %v725_v48 }
 0x257   : > { %v1815_v55 = vpop.permute.xlu1 %1814  ;;  %2720 = vmatprep.subr.mxu1 %v3031_v2  ;;  %v2300_v58 = vmul.f32 -1.442695, %v501_v11  ;;  %p2938_p4 = pnand %p2937_p11, %p4508_p12 }
 0x258   : > { %v1752_v57 = vpop.permute.xlu0 %1751  ;;  %v2303_v28 = vmul.f32 -1.442695, %v736_v36 }
 0x259   : > { %v1834_v44 = vsel %vm3426_vm2, %v1752_v57, %v1815_v55  ;;  %1994 = vrot.lane.b32.xlu1 %v4017_v15, %s3016_s5  ;;  %2837 = vpow2.f32 %v2300_v58  ;;  %p2939_p1 = pneg %p2938_p4 }
 0x25a   : > { %1931 = vrot.lane.b32.xlu0 %v4020_v41, %s3016_s5  ;;  %2686 = vmatpush3.msra.mxu0 %v1834_v44  ;;  %2839 = vpow2.f32 %v2303_v28  ;;  %s746_s5 = sadd.s32 2, %s4230_s25 }
 0x25b   : > { %v2051_v54 = vpop.permute.xlu1 %2050  ;;  %2687 = vmatprep.subr.mxu0 %v3031_v2  ;;  %s967_s19 = sld [smem:[#allocation3 + %s746_s5]] }
 0x25c   : > { %v1988_v27 = vpop.permute.xlu0 %1987 }
 0x25d   : > { %v2070_v38 = vsel %vm3426_vm2, %v1988_v27, %v2051_v54 }
 0x25e   : > { %2721 = vmatpush3.msra.mxu1 %v2070_v38 }
 0x25f   : > { %v1811_v12 = vpop.permute.xlu1 %1810  ;;  %2722 = vmatprep.subr.mxu1 %v3031_v2 }
 0x260   : > { %v1748_v15 = vpop.permute.xlu0 %1747 }
 0x261   : > { %v1833_v41 = vsel %vm3436_vm3, %v1748_v15, %v1811_v12  ;;  %v970_v30 = vstv %s967_s19  ;;  %s2163_s19 = scalar_lea.sflag [#allocation5], %s3209_s4 }
 0x262   : > { %2688 = vmatpush3.msra.mxu0 %v1833_v41  ;;  %v971_v44 = vmul.f32 %v3958_v5, %v970_v30 }
 0x263   : > { %v2047_v25 = vpop.permute.xlu1 %2046  ;;  %2689 = vmatprep.subr.mxu0 %v3031_v2 }
 0x264   : > { %v1984_v16 = vpop.permute.xlu0 %1983 }
 0x265   : > { %v2069_v60 = vsel %vm3436_vm3, %v1984_v16, %v2047_v25 }
 0x266   : > { %2723 = vmatpush3.msra.mxu1 %v2069_v60  ;;  %v2838_v1 = vpop.eup %2837 }
 0x267   : > { %v1807_v49 = vpop.permute.xlu1 %1806  ;;  %2724 = vmatprep.subr.mxu1 %v3031_v2  ;;  %v2840_v3 = vpop.eup %2839  ;;  %v505_v19 = vadd.f32 1.0, %v2838_v1 }
 0x268   : > { %v1744_v26 = vpop.permute.xlu0 %1743  ;;  %v740_v8 = vadd.f32 1.0, %v2840_v3 }
 0x269   : > { %v1832_v63 = vsel %vm3449_vm4, %v1744_v26, %v1807_v49  ;;  %2841 = vrcp.f32 %v505_v19 }
 0x26a   : > { %2690 = vmatpush3.msra.mxu0 %v1832_v63  ;;  %2843 = vrcp.f32 %v740_v8 }
 0x26b   : > { %v2043_v21 = vpop.permute.xlu1 %2042  ;;  %2691 = vmatprep.subr.mxu0 %v3031_v2 }
 0x26c   : > { %v1980_v35 = vpop.permute.xlu0 %1979 }
 0x26d   : > { %v2068_v51 = vsel %vm3449_vm4, %v1980_v35, %v2043_v21 }
 0x26e   : > { %2725 = vmatpush3.msra.mxu1 %v2068_v51 }
 0x26f   : > { %v1803_v17 = vpop.permute.xlu1 %1802  ;;  %2726 = vmatprep.subr.mxu1 %v3031_v2 }
 0x270   : > { %v1740_v6 = vpop.permute.xlu0 %1739 }
 0x271   : > { %v1831_v43 = vsel %vm3463_vm5, %v1740_v6, %v1803_v17 }
 0x272   : > { %2692 = vmatpush3.msra.mxu0 %v1831_v43 }
 0x273   : > { %v2039_v13 = vpop.permute.xlu1 %2038  ;;  %2693 = vmatprep.subr.mxu0 %v3031_v2 }
 0x274   : > { %v1976_v45 = vpop.permute.xlu0 %1975 }
 0x275   : > { %v2067_v56 = vsel %vm3463_vm5, %v1976_v45, %v2039_v13 }
 0x276   : > { %2727 = vmatpush3.msra.mxu1 %v2067_v56  ;;  %v2842_v39 = vpop.eup %2841 }
 0x277   : > { %v1799_v46 = vpop.permute.xlu1 %1798  ;;  %2728 = vmatprep.subr.mxu1 %v3031_v2  ;;  %v2844_v40 = vpop.eup %2843  ;;  %v508_v50 = vmul.f32 %v2842_v39, %v501_v11 }
 0x278   : > { %v1736_v47 = vpop.permute.xlu0 %1735  ;;  %v743_v22 = vmul.f32 %v2844_v40, %v736_v36  ;;  %v1206_v36 = vstv %s1203_s27 }
 0x279   : > { %v1830_v48 = vsel %vm3477_vm6, %v1736_v47, %v1799_v46  ;;  %509 = vst [vmem:[%s4288_s22] sm:$0xff] %v508_v50  ;;  %v1207_v28 = vmul.f32 %v3969_v42, %v1206_v36 }
 0x27a   : > { %2694 = vmatpush3.msra.mxu0 %v1830_v48  ;;  %2304 = vst [vmem:[%s4288_s22 + $0x8] sm:$0xff] %v743_v22 }
 0x27b   : > { %v2035_v32 = vpop.permute.xlu1 %2034  ;;  %2695 = vmatprep.subr.mxu0 %v3031_v2 }
 0x27c   : > { %v1972_v59 = vpop.permute.xlu0 %1971 }
 0x27d   : > { %v2066_v23 = vsel %vm3477_vm6, %v1972_v59, %v2035_v32 }
 0x27e   : > { %2729 = vmatpush3.msra.mxu1 %v2066_v23 }
 0x27f   : > { %v1795_v52 = vpop.permute.xlu1 %1794  ;;  %2730 = vmatprep.subr.mxu1 %v3031_v2 }
 0x280   : > { %v1732_v9 = vpop.permute.xlu0 %1731 }
 0x281   : > { %v1829_v61 = vsel %vm3491_vm7, %v1732_v9, %v1795_v52 }
 0x282   : > { %2696 = vmatpush3.msra.mxu0 %v1829_v61 }
 0x283   : > { %v2031_v0 = vpop.permute.xlu1 %2030  ;;  %2697 = vmatprep.subr.mxu0 %v3031_v2 }
 0x284   : > { %v1968_v55 = vpop.permute.xlu0 %1967 }
 0x285   : > { %v2065_v62 = vsel %vm3491_vm7, %v1968_v55, %v2031_v0 }
 0x286   : > { %2731 = vmatpush3.msra.mxu1 %v2065_v62 }
 0x287   : > { %v1791_v57 = vpop.permute.xlu1 %1790  ;;  %2732 = vmatprep.subr.mxu1 %v3031_v2 }
 0x288   : > { %v1728_v53 = vpop.permute.xlu0 %1727 }
 0x289   : > { %v1828_v11 = vsel %vm3505_vm8, %v1728_v53, %v1791_v57 }
 0x28a   : > { %2698 = vmatpush3.msra.mxu0 %v1828_v11 }
 0x28b   : > { %v2027_v54 = vpop.permute.xlu1 %2026  ;;  %2699 = vmatprep.subr.mxu0 %v3031_v2  ;;  %v961_v58 = vpop.f32.mrf.mxu0 }
 0x28c   : > { %v1964_v27 = vpop.permute.xlu0 %1963  ;;  %v972_v4 = vadd.f32 %v971_v44, %v961_v58 }
 0x28d   : > { %v2064_v38 = vsel %vm3505_vm8, %v1964_v27, %v2027_v54  ;;  %v2577_v12 = vpop.f32.mrf.mxu0 }
 0x28e   : > { %2733 = vmatpush3.msra.mxu1 %v2064_v38  ;;  %v2307_v15 = vmul.f32 -1.442695, %v972_v4  ;;  %v2321_v38 = vld [vmem:[%s3223_s28 + $0x30] sm:$0xff] }
 0x28f   : > { %v1787_v5 = vpop.permute.xlu1 %1786  ;;  %2734 = vmatprep.subr.mxu1 %v3031_v2  ;;  %v1197_v41 = vpop.f32.mrf.mxu1 }
 0x290   : > { %v1724_v25 = vpop.permute.xlu0 %1723  ;;  %2845 = vpow2.f32 %v2307_v15  ;;  %v1208_v16 = vadd.f32 %v1207_v28, %v1197_v41  ;;  %v2325_v41 = vld [vmem:[%s3223_s28 + $0x38] sm:$0xff]  ;;  %s1690_s28 = sadd.s32 6, %s4230_s25  ;;  %s2336_s25 = sshll.u32 %s3077_s16, 10 }
 0x291   : > { %v1827_v60 = vsel %vm4507_vm1, %v1724_v25, %v1787_v5  ;;  %v2612_v49 = vpop.f32.mrf.mxu1  ;;  %s1911_s26 = sld [smem:[#allocation3 + %s1690_s28]]  ;;  %s4372_s11 = scalar_lea.hbm %s4421_s3, %s2336_s25 }
 0x292   : > { %2700 = vmatpush3.msra.mxu0 %v1827_v60  ;;  %v2311_v26 = vmul.f32 -1.442695, %v1208_v16  ;;  %s3033_s16 = smov [#allocation10]  }
 0x293   : > { %v2023_v42 = vpop.permute.xlu1 %2022  ;;  %2701 = vmatprep.subr.mxu0 %v3031_v2  ;;  %s2940_s27 = sshll.u32 %s3033_s16, 4  ;;  %s2941_s27 = int_to_ptr.vmem [resolvable:$false] %s2940_s27 }
 0x294   : > { %v1960_v24 = vpop.permute.xlu0 %1959  ;;  %2847 = vpow2.f32 %v2311_v26  ;;  %s2942_s29 = scalar_lea.vmem %s2941_s27, 2048  ;;  %p2943_p2 = scmp.lt.s32.totalorder %s4374_s7, %s2941_s27 }
 0x295   : > { %v2063_v63 = vsel %vm4507_vm1, %v1960_v24, %v2023_v42  ;;  %p2944_p7 = scmp.lt.s32.totalorder %s2942_s29, %s2936_s20 }
 0x296   : > { %2735 = vmatpush3.msra.mxu1 %v2063_v63 }
 0x297   : > { %v1783_v1 = vpop.permute.xlu1 %1782  ;;  %2736 = vmatprep.subr.mxu1 %v3031_v2  ;;  %p2945_p8 = por %p2944_p7, %p2943_p2 }
 0x298   : > { %v1720_v3 = vpop.permute.xlu0 %1719 }
 0x299   : > { %v1826_v21 = vsel %vm3535_vm10, %v1720_v3, %v1783_v1  ;;  %p2946_p13 = pnand %p2945_p8, %p2939_p1 }
 0x29a   : > { %2702 = vmatpush3.msra.mxu0 %v1826_v21 }
 0x29b   : > { %v2019_v19 = vpop.permute.xlu1 %2018  ;;  %2703 = vmatprep.subr.mxu0 %v3031_v2 }
 0x29c   : > { %v1956_v35 = vpop.permute.xlu0 %1955 }
 0x29d   : > { %v2846_v8 = vpop.eup %2845  ;;  %v2062_v51 = vsel %vm3535_vm10, %v1956_v35, %v2019_v19 }
 0x29e   : > { %2737 = vmatpush3.msra.mxu1 %v2062_v51  ;;  %v976_v20 = vadd.f32 1.0, %v2846_v8 }
 0x29f   : > { %v1779_v17 = vpop.permute.xlu1 %1778  ;;  %2738 = vmatprep.subr.mxu1 %v3031_v2 }
 0x2a0   : > { %v1716_v6 = vpop.permute.xlu0 %1715  ;;  %2849 = vrcp.f32 %v976_v20 }
 0x2a1   : > { %v2848_v43 = vpop.eup %2847  ;;  %v1825_v13 = vsel %vm4505_vm9, %v1716_v6, %v1779_v17  ;;  %v1914_v17 = vstv %s1911_s26 }
 0x2a2   : > { %2704 = vmatpush3.msra.mxu0 %v1825_v13  ;;  %v1212_v45 = vadd.f32 1.0, %v2848_v43  ;;  %v1915_v6 = vmul.f32 %v2321_v38, %v1914_v17  ;;  %v2150_v43 = vstv %s2147_s30 }
 0x2a3   : > { %v2015_v56 = vpop.permute.xlu1 %2014  ;;  %2705 = vmatprep.subr.mxu0 %v3031_v2 }
 0x2a4   : > { %v1952_v46 = vpop.permute.xlu0 %1951  ;;  %2851 = vrcp.f32 %v1212_v45 }
 0x2a5   : > { %v2061_v33 = vsel %vm4505_vm9, %v1952_v46, %v2015_v56  ;;  %v2151_v56 = vmul.f32 %v2325_v41, %v2150_v43 }
 0x2a6   : > { %2739 = vmatpush3.msra.mxu1 %v2061_v33 }
 0x2a7   : > { %v1775_v47 = vpop.permute.xlu1 %1774  ;;  %2740 = vmatprep.subr.mxu1 %v3031_v2 }
 0x2a8   : > { %v1712_v48 = vpop.permute.xlu0 %1711 }
 0x2a9   : > { %v1824_v39 = vsel %vm3565_vm12, %v1712_v48, %v1775_v47 }
 0x2aa   : > { %2706 = vmatpush3.msra.mxu0 %v1824_v39 }
 0x2ab   : > { %v2011_v40 = vpop.permute.xlu1 %2010  ;;  %2707 = vmatprep.subr.mxu0 %v3031_v2 }
 0x2ac   : > { %v1948_v32 = vpop.permute.xlu0 %1947 }
 0x2ad   : > { %v2850_v50 = vpop.eup %2849  ;;  %v2060_v18 = vsel %vm3565_vm12, %v1948_v32, %v2011_v40 }
 0x2ae   : > { %2741 = vmatpush3.msra.mxu1 %v2060_v18  ;;  %v979_v59 = vmul.f32 %v2850_v50, %v972_v4 }
 0x2af   : > { %v1771_v22 = vpop.permute.xlu1 %1770  ;;  %2742 = vmatprep.subr.mxu1 %v3031_v2 }
 0x2b0   : > { %v1708_v23 = vpop.permute.xlu0 %1707  ;;  %2308 = vst [vmem:[%s4288_s22 + $0x10] sm:$0xff] %v979_v59 }
 0x2b1   : > { %v2852_v52 = vpop.eup %2851  ;;  %v1823_v9 = vsel %vm4503_vm11, %v1708_v23, %v1771_v22 }
 0x2b2   : > { %2708 = vmatpush3.msra.mxu0 %v1823_v9  ;;  %v1215_v61 = vmul.f32 %v2852_v52, %v1208_v16  ;;  %v1678_v16 = vstv %s1675_s17 }
 0x2b3   : > { %v2007_v0 = vpop.permute.xlu1 %2006  ;;  %2709 = vmatprep.subr.mxu0 %v3031_v2  ;;  %v1679_v26 = vmul.f32 %v4217_v34, %v1678_v16 }
 0x2b4   : > { %v1944_v55 = vpop.permute.xlu0 %1943  ;;  %2312 = vst [vmem:[%s4288_s22 + $0x18] sm:$0xff] %v1215_v61 }
 0x2b5   : > { %v2059_v31 = vsel %vm4503_vm11, %v1944_v55, %v2007_v0 }
 0x2b6   : > { %2743 = vmatpush3.msra.mxu1 %v2059_v31 }
 0x2b7   : > { %v1767_v62 = vpop.permute.xlu1 %1766  ;;  %2744 = vmatprep.subr.mxu1 %v3031_v2 }
 0x2b8   : > { %v1704_v30 = vpop.permute.xlu0 %1703 }
 0x2b9   : > { %v1822_v57 = vsel %vm3591_vm14, %v1704_v30, %v1767_v62 }
 0x2ba   : > { %2710 = vmatpush3.msra.mxu0 %v1822_v57 }
 0x2bb   : > { %v2003_v53 = vpop.permute.xlu1 %2002  ;;  %2711 = vmatprep.subr.mxu0 %v3031_v2 }
 0x2bc   : > { %v1940_v44 = vpop.permute.xlu0 %1939 }
 0x2bd   : > { %v2058_v11 = vsel %vm3591_vm14, %v1940_v44, %v2003_v53 }
 0x2be   : > { %2745 = vmatpush3.msra.mxu1 %v2058_v11 }
 0x2bf   : > { %v1763_v14 = vpop.permute.xlu1 %1762  ;;  %2746 = vmatprep.subr.mxu1 %v3031_v2 }
 0x2c0   : > { %v1700_v36 = vpop.permute.xlu0 %1699 }
 0x2c1   : > { %v1821_v54 = vsel %vm4501_vm13, %v1700_v36, %v1763_v14 }
 0x2c2   : > { %2712 = vmatpush3.msra.mxu0 %v1821_v54 }
 0x2c3   : > { %v1999_v58 = vpop.permute.xlu1 %1998  ;;  %2713 = vmatprep.subr.mxu0 %v3031_v2 }
 0x2c4   : > { %v1936_v27 = vpop.permute.xlu0 %1935 }
 0x2c5   : > { %v2057_v29 = vsel %vm4501_vm13, %v1936_v27, %v1999_v58 }
 0x2c6   : > { %2747 = vmatpush3.msra.mxu1 %v2057_v29 }
 0x2c7   : > { %v1759_v4 = vpop.permute.xlu1 %1758  ;;  %2748 = vmatprep.subr.mxu1 %v3031_v2  ;;  %v1442_v2 = vstv %s1439_s6 }
 0x2c8   : > { %v1696_v28 = vpop.permute.xlu0 %1695  ;;  %v1443_v25 = vmul.f32 %v4206_v37, %v1442_v2 }
 0x2c9   : > { %v1820_v12 = vsel %vm3616_vm0, %v1696_v28, %v1759_v4 }
 0x2ca   : > { %2714 = vmatpush3.msra.mxu0 %v1820_v12 }
 0x2cb   : > { %2716 = vmatmul.mubr.f32.vlgmr.msra.gmra.mxu0 %v2321_v38  ;;  %v1995_v15 = vpop.permute.xlu1 %1994 }
 0x2cc   : > { %v1932_v5 = vpop.permute.xlu0 %1931 }
 0x2cd   : > { %v2056_v10 = vsel %vm3616_vm0, %v1932_v5, %v1995_v15 }
 0x2ce   : > { %2749 = vmatpush3.msra.mxu1 %v2056_v10 }
 0x2cf   : > { %2751 = vmatmul.mubr.f32.vlgmr.msra.gmra.mxu1 %v2325_v41 }
 0x30b   : > { %v1433_v60 = vpop.f32.mrf.mxu0 }
 0x30c   : > { %v1444_v49 = vadd.f32 %v1443_v25, %v1433_v60 }
 0x30d   : > { %v2647_v42 = vpop.f32.mrf.mxu0 }
 0x30e   : > { %v2315_v24 = vmul.f32 -1.442695, %v1444_v49 }
 0x30f   : > { %v1669_v63 = vpop.f32.mrf.mxu1 }
 0x310   : > { %2853 = vpow2.f32 %v2315_v24  ;;  %v1680_v7 = vadd.f32 %v1679_v26, %v1669_v63 }
 0x311   : > { %v2682_v1 = vpop.f32.mrf.mxu1 }
 0x312   : > { %v2319_v3 = vmul.f32 -1.442695, %v1680_v7 }
 0x314   : > { %2855 = vpow2.f32 %v2319_v3 }
 0x31d   : > { %v2854_v21 = vpop.eup %2853 }
 0x31e   : > { %v1448_v19 = vadd.f32 1.0, %v2854_v21 }
 0x320   : > { %2857 = vrcp.f32 %v1448_v19 }
 0x321   : > { %v2856_v37 = vpop.eup %2855 }
 0x322   : > { %v1684_v35 = vadd.f32 1.0, %v2856_v37 }
 0x324   : > { %2859 = vrcp.f32 %v1684_v35 }
 0x32d   : > { %v2858_v8 = vpop.eup %2857 }
 0x32e   : > { %v1451_v34 = vmul.f32 %v2858_v8, %v1444_v49 }
 0x330   : > { %2316 = vst [vmem:[%s4288_s22 + $0x20] sm:$0xff] %v1451_v34 }
 0x331   : > { %v2860_v51 = vpop.eup %2859 }
 0x332   : > { %v1687_v20 = vmul.f32 %v2860_v51, %v1680_v7 }
 0x334   : > { %2320 = vst [vmem:[%s4288_s22 + $0x28] sm:$0xff] %v1687_v20 }
 0x38b   : > { %v1905_v13 = vpop.f32.mrf.mxu0 }
 0x38c   : > { %v1916_v45 = vadd.f32 %v1915_v6, %v1905_v13 }
 0x38d   : > { %v2717_v46 = vpop.f32.mrf.mxu0 }
 0x38e   : > { %v2323_v33 = vmul.f32 -1.442695, %v1916_v45 }
 0x38f   : > { %v2141_v47 = vpop.f32.mrf.mxu1 }
 0x390   : > { %2861 = vpow2.f32 %v2323_v33  ;;  %v2152_v48 = vadd.f32 %v2151_v56, %v2141_v47 }
 0x391   : > { %v2752_v39 = vpop.f32.mrf.mxu1 }
 0x392   : > { %v2327_v40 = vmul.f32 -1.442695, %v2152_v48 }
 0x394   : > { %2863 = vpow2.f32 %v2327_v40 }
 0x39d   : > { %v2862_v32 = vpop.eup %2861 }
 0x39e   : > { %v1920_v50 = vadd.f32 1.0, %v2862_v32 }
 0x3a0   : > { %2865 = vrcp.f32 %v1920_v50 }
 0x3a1   : > { %v2864_v18 = vpop.eup %2863 }
 0x3a2   : > { %v2156_v59 = vadd.f32 1.0, %v2864_v18 }
 0x3a4   : > { %2867 = vrcp.f32 %v2156_v59 }
 0x3ad   : > { %v2866_v22 = vpop.eup %2865 }
 0x3ae   : > { %v1923_v23 = vmul.f32 %v2866_v22, %v1916_v45 }
 0x3b0   : > { %2324 = vst [vmem:[%s4288_s22 + $0x30] sm:$0xff] %v1923_v23 }
 0x3b1   : > { %v2868_v52 = vpop.eup %2867 }
 0x3b2   : > { %v2159_v9 = vmul.f32 %v2868_v52, %v2152_v48 }
 0x3b4   : > { %2328 = vst [vmem:[%s4288_s22 + $0x38] sm:$0xff] %v2159_v9 }
 0x3b5   : > { %2949 = shalt.err (!%p2946_p13)
}
 0x3b6   : > { %s2950_s22 = scalar_lea.hbm %s4372_s11, 1024  ;;  %s2954_s17 = scalar_lea.hbm %s4421_s3, 2048 }
 0x3b7   : > { %p2951_p3 = scmp.ne.s32.totalorder %s4372_s11, %s2950_s22  ;;  %p2955_p6 = scmp.lt.s32.totalorder %s4372_s11, %s4421_s3 }
 0x3b8   : > { %p2956_p10 = scmp.lt.s32.totalorder %s2954_s17, %s2950_s22 }
 0x3b9   : > { %p2952_p5 = pnand %p2951_p3, %p4508_p12 }
 0x3ba   : > { %p2957_p0 = por %p2956_p10, %p2955_p6 }
 0x3bb   : > { %p2953_p9 = pneg %p2952_p5 }
 0x3bd   : > { %p2958_p11 = pnand %p2957_p0, %p2953_p9 }
 0x3bf   : > { %2961 = shalt.err (!%p2958_p11)
}
 0x3c0   : > { %s3034_s10 = smov 128   ;;  %s3035_s30 = smov 8  }
 0x3c1   : > { %2761 = dma.vmem_to_hbm [thread:$0]  (%p4508_p12), %s4374_s7, 1024, %s4372_s11, %s2163_s19, %s3034_s10, %s3034_s10, %s3035_s30  }
 0x3c2 PF: > { %s2191_s25 = sand.u32 1, %s2996_s12   ;;  %p4509_p4 = scmp.ne.s32.totalorder %s4455_s24, 0 }
 0x3c3   : > { %p4510_p1 = scmp.ge.s32.totalorder %s3008_s15, 2  ;;  %s2192_s8 = scalar_lea.sflag [#allocation5], %s2191_s25 }
 0x3c5   : > { %p2775_p2 = pnand %p4510_p1, %p4509_p4 }
 0x3c7   : > { %p2776_p7 = pneg %p2775_p2 }
 0x3c9   : > { %2991 = dma.done.wait (%p2776_p7), %s2192_s8, 1024  }
 0x3ca   : > { %2993 = vsyncadd (%p2776_p7), %s2192_s8, 4294966272  ;;  %p20_p8 = scmp.ge.s32.totalorder %s3081_s18, 4   ;;  %s4511_s12 = smov %s3000_s13 }
 0x3cb   : > { %s4512_s13 = smov %s3004_s14  ;;  %s4513_s14 = smov %s3093_s21 }
 0x3cc   : > { %s4514_s15 = smov %s3081_s18  ;;  %22 = sbr.rel (!%p20_p8) target bundleno = 8 (0x8), region = 109 }
 0x3d1   :  { %2197 = vsyncpa [#allocation4], 1 }
 0x3d2   :  { %2199 = vsyncpa [#allocation4 + $0x1], 1 }
 0x3d3   :  { %2200 = vsyncpa [#allocation9], 1 }
 0x3d4   :  { %2202 = vsyncpa [#allocation9 + $0x1], 1 }
 0x3d5   :  { %2203 = vsyncpa [#allocation5], 1 }
 0x3d6   :  { %2205 = vsyncpa [#allocation5 + $0x1], 1 }
 0x3d7   :  { %2206 = vsyncpa [#allocation6], 1 }
 0x3d8   :  { %2208 = vsyncpa [#allocation6 + $0x1], 1 }

</bundles_post_ra>
